<compile_context>
chip_gen: v7x
topology: tpu7x:2x2x1
jax: 0.10.0
libtpu: 0.0.40
codegen_flags: <defaults>
</compile_context>

<pallas_src>
import functools

import jax
import jax.numpy as jnp
from jax.experimental import pallas as pl
from jax.experimental.pallas import tpu as pltpu

LEAKY_SLOPE = 0.2
BN_EPS = 0.8  # positional arg in nn.BatchNorm1d(out_feat, 0.8) is eps
LANE = 128


def _leaky_relu(x):
    # slope < 1  =>  leaky_relu(x) == max(x, slope * x); single VPU max.
    return jnp.maximum(x, LEAKY_SLOPE * x)


def _bn_leaky_bf16(x, gamma, beta):
    """Training-mode BatchNorm1d folded to scale/shift, fused LeakyReLU.

    All statistics in f32; returns the bf16 activation that feeds the next
    matmul (single materialized copy).
    """
    mean = jnp.mean(x, axis=0, keepdims=True)                 # (1, F)
    mean_sq = jnp.mean(x * x, axis=0, keepdims=True)          # (1, F)
    var = jnp.maximum(mean_sq - mean * mean, 0.0)
    scale = jax.lax.rsqrt(var + BN_EPS) * gamma               # (1, F) row math
    shift = beta - mean * scale
    y = x * scale + shift                                     # 2 VPU ops/elem
    return _leaky_relu(y).astype(jnp.bfloat16)


def generator_kernel(
    z_ref,
    w1_ref, b1_ref,
    w2_ref, g2_ref, be2_ref,
    w3_ref, g3_ref, be3_ref,
    w4_hbm_ref, g4_ref, be4_ref,
    w5_hbm_ref, b5_ref,
    out_ref,
    w4_vmem, w5_vmem, dma_sem,
):
    # Prefetch the large late-layer weights behind blocks 1-3 compute.
    # w4 first: it is needed one layer before w5.
    w4_cp = pltpu.make_async_copy(w4_hbm_ref, w4_vmem, dma_sem.at[0])
    w5_cp = pltpu.make_async_copy(w5_hbm_ref, w5_vmem, dma_sem.at[1])
    w4_cp.start()
    w5_cp.start()

    # Block 1: Linear(latent, 128) + LeakyReLU (no BatchNorm -> bias matters)
    h = jnp.dot(z_ref[...], w1_ref[...],
                preferred_element_type=jnp.float32) + b1_ref[...]
    h = _leaky_relu(h).astype(jnp.bfloat16)

    # Block 2: Linear(128, 256) + BN + LeakyReLU   (bias cancels in BN)
    h = jnp.dot(h, w2_ref[...], preferred_element_type=jnp.float32)
    h = _bn_leaky_bf16(h, g2_ref[...], be2_ref[...])

    # Block 3: Linear(256, 512) + BN + LeakyReLU
    h = jnp.dot(h, w3_ref[...], preferred_element_type=jnp.float32)
    h = _bn_leaky_bf16(h, g3_ref[...], be3_ref[...])

    # Block 4: Linear(512, 1024) + BN + LeakyReLU
    w4_cp.wait()
    h = jnp.dot(h, w4_vmem[...], preferred_element_type=jnp.float32)
    h = _bn_leaky_bf16(h, g4_ref[...], be4_ref[...])

    # Head: Linear(1024, out_dim_padded) + Tanh; store bf16 (lane-dense slab).
    w5_cp.wait()
    h = jnp.dot(h, w5_vmem[...],
                preferred_element_type=jnp.float32) + b5_ref[...]
    out_ref[...] = jnp.tanh(h).astype(out_ref.dtype)


def _pad_axis(x, axis, multiple=LANE):
    pad = (-x.shape[axis]) % multiple
    if pad == 0:
        return x
    widths = [(0, 0)] * x.ndim
    widths[axis] = (0, pad)
    return jnp.pad(x, widths)


def _vmem_limit_bytes(batch, latent_pad, out_pad):
    """Working-set-derived VMEM budget (Python ints at trace time)."""
    bf16, f32 = 2, 4
    weights = (latent_pad * 128 + 128 * 256 + 256 * 512
               + 512 * 1024 + 1024 * out_pad) * bf16
    smalls = (128 + 2 * 256 + 2 * 512 + 2 * 1024 + out_pad) * f32
    per_row = (latent_pad * bf16
               + 256 * (f32 + bf16)
               + 512 * (f32 + bf16)
               + 1024 * (f32 + bf16)
               + out_pad * (f32 + bf16))
    est = 2 * weights + smalls + 2 * batch * per_row + (4 << 20)
    # Cap at 48 MiB: safe on v7x (64 MiB physical per TC).  On v5e/v6e
    # (128 MiB physical) this cap can be raised toward ~96 MiB for huge B.
    return int(min(max(est, 16 << 20), 48 << 20))


@functools.partial(jax.jit, static_argnames=("out_dim",))
def generator_forward(z, params, out_dim):
    B = z.shape[0]
    # BN stats are computed over the whole batch inside ONE invocation; the
    # sublane constraint also wants B % 8 == 0 (ideally %16 for bf16 packing).
    assert B % 8 == 0, "batch must be a multiple of 8 (sublane alignment)"

    latent_pad = params["w1"].shape[0]          # pre-padded at init
    out_pad = params["w5"].shape[1]             # pre-padded at init
    assert out_pad % LANE == 0 and out_pad >= out_dim

    # Only z is padded per call (weights are padded/cast once in init_params).
    z_bf = _pad_axis(z.astype(jnp.bfloat16), axis=1)       # (B, latent_pad)
    assert z_bf.shape[1] == latent_pad

    flat_inputs = (
        z_bf,
        params["w1"], params["b1"],
        params["w2"], params["g2"], params["be2"],
        params["w3"], params["g3"], params["be3"],
        params["w4"], params["g4"], params["be4"],
        params["w5"], params["b5"],
    )

    vmem = pl.BlockSpec(memory_space=pltpu.MemorySpace.VMEM)
    hbm = pl.BlockSpec(memory_space=pl.ANY)   # w4 / w5: manually DMA'd
    in_specs = [vmem] * 9 + [hbm] + [vmem] * 2 + [hbm] + [vmem]

    out = pl.pallas_call(
        generator_kernel,
        out_shape=jax.ShapeDtypeStruct((B, out_pad), jnp.bfloat16),
        in_specs=in_specs,
        out_specs=vmem,
        scratch_shapes=[
            pltpu.VMEM(params["w4"].shape, jnp.bfloat16),
            pltpu.VMEM(params["w5"].shape, jnp.bfloat16),
            pltpu.SemaphoreType.DMA((2,)),
        ],
        compiler_params=pltpu.CompilerParams(
            vmem_limit_bytes=_vmem_limit_bytes(B, latent_pad, out_pad)),
    )(*flat_inputs)

    # Slice off lane padding; output stays bf16 (tanh range fits trivially).
    return out[:, :out_dim]


def init_params(key, latent_dim, out_dim):
    """Deterministic synthetic parameters, pre-padded / pre-cast for the kernel.

    Shapes correspond to the PyTorch module: w{i} is the transposed
    nn.Linear weight (in, out), b{i} the bias, g/be the BatchNorm affine
    params (default init gamma=1, beta=0).  b2/b3/b4 are not created because
    a bias immediately before training-mode BatchNorm is mathematically inert.
    """
    dims = [latent_dim, 128, 256, 512, 1024, out_dim]
    keys = jax.random.split(key, 10)
    p = {}
    for i in range(5):
        fan_in, fan_out = dims[i], dims[i + 1]
        bound = 1.0 / jnp.sqrt(fan_in)
        w = jax.random.uniform(
            keys[2 * i], (fan_in, fan_out), jnp.float32, -bound, bound)
        b = jax.random.uniform(
            keys[2 * i + 1], (1, fan_out), jnp.float32, -bound, bound)
        p[f"w{i + 1}"] = w.astype(jnp.bfloat16)
        if i == 0 or i == 4:
            p[f"b{i + 1}"] = b      # only b1 and b5 affect the output
    # Pre-pad ragged dims to lane multiples (zero padding is exact for matmul).
    p["w1"] = _pad_axis(p["w1"], axis=0)        # (latent_pad, 128)
    p["w5"] = _pad_axis(p["w5"], axis=1)        # (1024, out_pad)
    p["b5"] = _pad_axis(p["b5"], axis=1)        # (1, out_pad)
    # BatchNorm affine params for blocks 2..4 (kept f32; applied on (1,F) row).
    for i, f in zip((2, 3, 4), (256, 512, 1024)):
        p[f"g{i}"] = jnp.ones((1, f), jnp.float32)
        p[f"be{i}"] = jnp.zeros((1, f), jnp.float32)
    return p


if __name__ == "__main__":
    latent_dim = 32
    out_dim = 64
    batch = 8  # small demo batch; use B >= 128 (v5e) / 256 (v6e, v7x) in prod

    key = jax.random.PRNGKey(0)
    k_params, k_z = jax.random.split(key)
    params = init_params(k_params, latent_dim, out_dim)
    z = jax.random.normal(k_z, (batch, latent_dim), jnp.float32)

    out = generator_forward(z, params, out_dim)
    out = jax.block_until_ready(out)

    assert out.shape == (batch, out_dim)
    assert out.dtype == jnp.bfloat16
    assert bool(jnp.all(jnp.isfinite(out.astype(jnp.float32))))
    assert bool(jnp.all(jnp.abs(out.astype(jnp.float32)) <= 1.0))  # tanh range
    print("KERNEL_OK")
</pallas_src>

<mosaic_0001>
module attributes {stable_mosaic.version = 11 : i64} {
  func.func @generator_kernel(%arg0: memref<8x128xbf16, #tpu.memory_space<vmem>>, %arg1: memref<128x128xbf16, #tpu.memory_space<vmem>>, %arg2: memref<1x128xf32, #tpu.memory_space<vmem>>, %arg3: memref<128x256xbf16, #tpu.memory_space<vmem>>, %arg4: memref<1x256xf32, #tpu.memory_space<vmem>>, %arg5: memref<1x256xf32, #tpu.memory_space<vmem>>, %arg6: memref<256x512xbf16, #tpu.memory_space<vmem>>, %arg7: memref<1x512xf32, #tpu.memory_space<vmem>>, %arg8: memref<1x512xf32, #tpu.memory_space<vmem>>, %arg9: memref<512x1024xbf16, #tpu.memory_space<any>>, %arg10: memref<1x1024xf32, #tpu.memory_space<vmem>>, %arg11: memref<1x1024xf32, #tpu.memory_space<vmem>>, %arg12: memref<1024x128xbf16, #tpu.memory_space<any>>, %arg13: memref<1x128xf32, #tpu.memory_space<vmem>>, %arg14: memref<8x128xbf16, #tpu.memory_space<vmem>>, %arg15: memref<512x1024xbf16, #tpu.memory_space<vmem>>, %arg16: memref<1024x128xbf16, #tpu.memory_space<vmem>>, %arg17: memref<2x!tpu.dma_semaphore, #tpu.memory_space<semaphore_mem>>) attributes {dimension_semantics = [], scalar_prefetch = 0 : i64, scratch_operands = 3 : i64, tpu.core_type = #tpu.core_type<tc>} {
    %c0_i32 = arith.constant 0 : i32
    %0 = tpu.memref_slice %arg17[%c0_i32] : memref<2x!tpu.dma_semaphore, #tpu.memory_space<semaphore_mem>> -> memref<1x!tpu.dma_semaphore, #tpu.memory_space<semaphore_mem>>
    %1 = tpu.memref_squeeze %0 : memref<1x!tpu.dma_semaphore, #tpu.memory_space<semaphore_mem>> -> memref<!tpu.dma_semaphore, #tpu.memory_space<semaphore_mem>>
    tpu.enqueue_dma source(%arg9 : memref<512x1024xbf16, #tpu.memory_space<any>>) target(%arg15 : memref<512x1024xbf16, #tpu.memory_space<vmem>>) target_semaphore(%1 : memref<!tpu.dma_semaphore, #tpu.memory_space<semaphore_mem>>)
    %c1_i32 = arith.constant 1 : i32
    %2 = tpu.memref_slice %arg17[%c1_i32] : memref<2x!tpu.dma_semaphore, #tpu.memory_space<semaphore_mem>> -> memref<1x!tpu.dma_semaphore, #tpu.memory_space<semaphore_mem>>
    %3 = tpu.memref_squeeze %2 : memref<1x!tpu.dma_semaphore, #tpu.memory_space<semaphore_mem>> -> memref<!tpu.dma_semaphore, #tpu.memory_space<semaphore_mem>>
    tpu.enqueue_dma source(%arg12 : memref<1024x128xbf16, #tpu.memory_space<any>>) target(%arg16 : memref<1024x128xbf16, #tpu.memory_space<vmem>>) target_semaphore(%3 : memref<!tpu.dma_semaphore, #tpu.memory_space<semaphore_mem>>)
    %c0 = arith.constant 0 : index
    %c0_0 = arith.constant 0 : index
    %4 = vector.load %arg0[%c0, %c0_0] : memref<8x128xbf16, #tpu.memory_space<vmem>>, vector<8x128xbf16>
    %c0_1 = arith.constant 0 : index
    %c0_2 = arith.constant 0 : index
    %5 = vector.load %arg1[%c0_1, %c0_2] : memref<128x128xbf16, #tpu.memory_space<vmem>>, vector<128x128xbf16>
    %cst = arith.constant dense<0.000000e+00> : vector<8x128xf32>
    %6 = tpu.matmul %4, %5, %cst {dimension_numbers = #tpu.dot_dimension_numbers<[1], [0], [0], [1], [0, 0, 1, 1], [], []>} : vector<8x128xbf16>, vector<128x128xbf16>, vector<8x128xf32> -> vector<8x128xf32>
    %c0_3 = arith.constant 0 : index
    %c0_4 = arith.constant 0 : index
    %7 = vector.load %arg2[%c0_3, %c0_4] : memref<1x128xf32, #tpu.memory_space<vmem>>, vector<1x128xf32>
    %8 = vector.broadcast %7 : vector<1x128xf32> to vector<8x128xf32>
    %9 = arith.addf %6, %8 : vector<8x128xf32>
    %cst_5 = arith.constant 2.000000e-01 : f32
    %10 = vector.broadcast %cst_5 : f32 to vector<8x128xf32>
    %11 = arith.mulf %10, %9 : vector<8x128xf32>
    %12 = arith.maximumf %9, %11 : vector<8x128xf32>
    %13 = arith.truncf %12 : vector<8x128xf32> to vector<8x128xbf16>
    %c0_6 = arith.constant 0 : index
    %c0_7 = arith.constant 0 : index
    %14 = vector.load %arg3[%c0_6, %c0_7] : memref<128x256xbf16, #tpu.memory_space<vmem>>, vector<128x256xbf16>
    %cst_8 = arith.constant dense<0.000000e+00> : vector<8x256xf32>
    %15 = tpu.matmul %13, %14, %cst_8 {dimension_numbers = #tpu.dot_dimension_numbers<[1], [0], [0], [1], [0, 0, 1, 1], [], []>} : vector<8x128xbf16>, vector<128x256xbf16>, vector<8x256xf32> -> vector<8x256xf32>
    %c0_9 = arith.constant 0 : index
    %c0_10 = arith.constant 0 : index
    %16 = vector.load %arg4[%c0_9, %c0_10] : memref<1x256xf32, #tpu.memory_space<vmem>>, vector<1x256xf32>
    %c0_11 = arith.constant 0 : index
    %c0_12 = arith.constant 0 : index
    %17 = vector.load %arg5[%c0_11, %c0_12] : memref<1x256xf32, #tpu.memory_space<vmem>>, vector<1x256xf32>
    %cst_13 = arith.constant dense<0.000000e+00> : vector<256xf32>
    %18 = vector.multi_reduction <add>, %15, %cst_13 [0] : vector<8x256xf32> to vector<256xf32>
    %19 = vector.shape_cast %18 : vector<256xf32> to vector<1x256xf32>
    %cst_14 = arith.constant 8.000000e+00 : f32
    %20 = vector.broadcast %cst_14 : f32 to vector<1x256xf32>
    %21 = arith.divf %19, %20 : vector<1x256xf32>
    %22 = arith.mulf %15, %15 : vector<8x256xf32>
    %cst_15 = arith.constant dense<0.000000e+00> : vector<256xf32>
    %23 = vector.multi_reduction <add>, %22, %cst_15 [0] : vector<8x256xf32> to vector<256xf32>
    %24 = vector.shape_cast %23 : vector<256xf32> to vector<1x256xf32>
    %cst_16 = arith.constant 8.000000e+00 : f32
    %25 = vector.broadcast %cst_16 : f32 to vector<1x256xf32>
    %26 = arith.divf %24, %25 : vector<1x256xf32>
    %27 = arith.mulf %21, %21 : vector<1x256xf32>
    %28 = arith.subf %26, %27 : vector<1x256xf32>
    %cst_17 = arith.constant 0.000000e+00 : f32
    %29 = vector.broadcast %cst_17 : f32 to vector<1x256xf32>
    %30 = arith.maximumf %28, %29 : vector<1x256xf32>
    %cst_18 = arith.constant 8.000000e-01 : f32
    %31 = vector.broadcast %cst_18 : f32 to vector<1x256xf32>
    %32 = arith.addf %30, %31 : vector<1x256xf32>
    %33 = math.rsqrt %32 : vector<1x256xf32>
    %34 = arith.mulf %33, %16 : vector<1x256xf32>
    %35 = arith.mulf %21, %34 : vector<1x256xf32>
    %36 = arith.subf %17, %35 : vector<1x256xf32>
    %37 = vector.broadcast %34 : vector<1x256xf32> to vector<8x256xf32>
    %38 = arith.mulf %15, %37 : vector<8x256xf32>
    %39 = vector.broadcast %36 : vector<1x256xf32> to vector<8x256xf32>
    %40 = arith.addf %38, %39 : vector<8x256xf32>
    %cst_19 = arith.constant 2.000000e-01 : f32
    %41 = vector.broadcast %cst_19 : f32 to vector<8x256xf32>
    %42 = arith.mulf %41, %40 : vector<8x256xf32>
    %43 = arith.maximumf %40, %42 : vector<8x256xf32>
    %44 = arith.truncf %43 : vector<8x256xf32> to vector<8x256xbf16>
    %c0_20 = arith.constant 0 : index
    %c0_21 = arith.constant 0 : index
    %45 = vector.load %arg6[%c0_20, %c0_21] : memref<256x512xbf16, #tpu.memory_space<vmem>>, vector<256x512xbf16>
    %cst_22 = arith.constant dense<0.000000e+00> : vector<8x512xf32>
    %46 = tpu.matmul %44, %45, %cst_22 {dimension_numbers = #tpu.dot_dimension_numbers<[1], [0], [0], [1], [0, 0, 1, 1], [], []>} : vector<8x256xbf16>, vector<256x512xbf16>, vector<8x512xf32> -> vector<8x512xf32>
    %c0_23 = arith.constant 0 : index
    %c0_24 = arith.constant 0 : index
    %47 = vector.load %arg7[%c0_23, %c0_24] : memref<1x512xf32, #tpu.memory_space<vmem>>, vector<1x512xf32>
    %c0_25 = arith.constant 0 : index
    %c0_26 = arith.constant 0 : index
    %48 = vector.load %arg8[%c0_25, %c0_26] : memref<1x512xf32, #tpu.memory_space<vmem>>, vector<1x512xf32>
    %cst_27 = arith.constant dense<0.000000e+00> : vector<512xf32>
    %49 = vector.multi_reduction <add>, %46, %cst_27 [0] : vector<8x512xf32> to vector<512xf32>
    %50 = vector.shape_cast %49 : vector<512xf32> to vector<1x512xf32>
    %cst_28 = arith.constant 8.000000e+00 : f32
    %51 = vector.broadcast %cst_28 : f32 to vector<1x512xf32>
    %52 = arith.divf %50, %51 : vector<1x512xf32>
    %53 = arith.mulf %46, %46 : vector<8x512xf32>
    %cst_29 = arith.constant dense<0.000000e+00> : vector<512xf32>
    %54 = vector.multi_reduction <add>, %53, %cst_29 [0] : vector<8x512xf32> to vector<512xf32>
    %55 = vector.shape_cast %54 : vector<512xf32> to vector<1x512xf32>
    %cst_30 = arith.constant 8.000000e+00 : f32
    %56 = vector.broadcast %cst_30 : f32 to vector<1x512xf32>
    %57 = arith.divf %55, %56 : vector<1x512xf32>
    %58 = arith.mulf %52, %52 : vector<1x512xf32>
    %59 = arith.subf %57, %58 : vector<1x512xf32>
    %cst_31 = arith.constant 0.000000e+00 : f32
    %60 = vector.broadcast %cst_31 : f32 to vector<1x512xf32>
    %61 = arith.maximumf %59, %60 : vector<1x512xf32>
    %cst_32 = arith.constant 8.000000e-01 : f32
    %62 = vector.broadcast %cst_32 : f32 to vector<1x512xf32>
    %63 = arith.addf %61, %62 : vector<1x512xf32>
    %64 = math.rsqrt %63 : vector<1x512xf32>
    %65 = arith.mulf %64, %47 : vector<1x512xf32>
    %66 = arith.mulf %52, %65 : vector<1x512xf32>
    %67 = arith.subf %48, %66 : vector<1x512xf32>
    %68 = vector.broadcast %65 : vector<1x512xf32> to vector<8x512xf32>
    %69 = arith.mulf %46, %68 : vector<8x512xf32>
    %70 = vector.broadcast %67 : vector<1x512xf32> to vector<8x512xf32>
    %71 = arith.addf %69, %70 : vector<8x512xf32>
    %cst_33 = arith.constant 2.000000e-01 : f32
    %72 = vector.broadcast %cst_33 : f32 to vector<8x512xf32>
    %73 = arith.mulf %72, %71 : vector<8x512xf32>
    %74 = arith.maximumf %71, %73 : vector<8x512xf32>
    %75 = arith.truncf %74 : vector<8x512xf32> to vector<8x512xbf16>
    %c0_i32_34 = arith.constant 0 : i32
    %76 = tpu.memref_slice %arg17[%c0_i32_34] : memref<2x!tpu.dma_semaphore, #tpu.memory_space<semaphore_mem>> -> memref<1x!tpu.dma_semaphore, #tpu.memory_space<semaphore_mem>>
    %77 = tpu.memref_squeeze %76 : memref<1x!tpu.dma_semaphore, #tpu.memory_space<semaphore_mem>> -> memref<!tpu.dma_semaphore, #tpu.memory_space<semaphore_mem>>
    tpu.wait_dma2 semaphore(%77 : memref<!tpu.dma_semaphore, #tpu.memory_space<semaphore_mem>>) src(%arg9 : memref<512x1024xbf16, #tpu.memory_space<any>>) dst(%arg15 : memref<512x1024xbf16, #tpu.memory_space<vmem>>)
    %c0_35 = arith.constant 0 : index
    %c0_36 = arith.constant 0 : index
    %78 = vector.load %arg15[%c0_35, %c0_36] : memref<512x1024xbf16, #tpu.memory_space<vmem>>, vector<512x1024xbf16>
    %cst_37 = arith.constant dense<0.000000e+00> : vector<8x1024xf32>
    %79 = tpu.matmul %75, %78, %cst_37 {dimension_numbers = #tpu.dot_dimension_numbers<[1], [0], [0], [1], [0, 0, 1, 1], [], []>} : vector<8x512xbf16>, vector<512x1024xbf16>, vector<8x1024xf32> -> vector<8x1024xf32>
    %c0_38 = arith.constant 0 : index
    %c0_39 = arith.constant 0 : index
    %80 = vector.load %arg10[%c0_38, %c0_39] : memref<1x1024xf32, #tpu.memory_space<vmem>>, vector<1x1024xf32>
    %c0_40 = arith.constant 0 : index
    %c0_41 = arith.constant 0 : index
    %81 = vector.load %arg11[%c0_40, %c0_41] : memref<1x1024xf32, #tpu.memory_space<vmem>>, vector<1x1024xf32>
    %cst_42 = arith.constant dense<0.000000e+00> : vector<1024xf32>
    %82 = vector.multi_reduction <add>, %79, %cst_42 [0] : vector<8x1024xf32> to vector<1024xf32>
    %83 = vector.shape_cast %82 : vector<1024xf32> to vector<1x1024xf32>
    %cst_43 = arith.constant 8.000000e+00 : f32
    %84 = vector.broadcast %cst_43 : f32 to vector<1x1024xf32>
    %85 = arith.divf %83, %84 : vector<1x1024xf32>
    %86 = arith.mulf %79, %79 : vector<8x1024xf32>
    %cst_44 = arith.constant dense<0.000000e+00> : vector<1024xf32>
    %87 = vector.multi_reduction <add>, %86, %cst_44 [0] : vector<8x1024xf32> to vector<1024xf32>
    %88 = vector.shape_cast %87 : vector<1024xf32> to vector<1x1024xf32>
    %cst_45 = arith.constant 8.000000e+00 : f32
    %89 = vector.broadcast %cst_45 : f32 to vector<1x1024xf32>
    %90 = arith.divf %88, %89 : vector<1x1024xf32>
    %91 = arith.mulf %85, %85 : vector<1x1024xf32>
    %92 = arith.subf %90, %91 : vector<1x1024xf32>
    %cst_46 = arith.constant 0.000000e+00 : f32
    %93 = vector.broadcast %cst_46 : f32 to vector<1x1024xf32>
    %94 = arith.maximumf %92, %93 : vector<1x1024xf32>
    %cst_47 = arith.constant 8.000000e-01 : f32
    %95 = vector.broadcast %cst_47 : f32 to vector<1x1024xf32>
    %96 = arith.addf %94, %95 : vector<1x1024xf32>
    %97 = math.rsqrt %96 : vector<1x1024xf32>
    %98 = arith.mulf %97, %80 : vector<1x1024xf32>
    %99 = arith.mulf %85, %98 : vector<1x1024xf32>
    %100 = arith.subf %81, %99 : vector<1x1024xf32>
    %101 = vector.broadcast %98 : vector<1x1024xf32> to vector<8x1024xf32>
    %102 = arith.mulf %79, %101 : vector<8x1024xf32>
    %103 = vector.broadcast %100 : vector<1x1024xf32> to vector<8x1024xf32>
    %104 = arith.addf %102, %103 : vector<8x1024xf32>
    %cst_48 = arith.constant 2.000000e-01 : f32
    %105 = vector.broadcast %cst_48 : f32 to vector<8x1024xf32>
    %106 = arith.mulf %105, %104 : vector<8x1024xf32>
    %107 = arith.maximumf %104, %106 : vector<8x1024xf32>
    %108 = arith.truncf %107 : vector<8x1024xf32> to vector<8x1024xbf16>
    %c1_i32_49 = arith.constant 1 : i32
    %109 = tpu.memref_slice %arg17[%c1_i32_49] : memref<2x!tpu.dma_semaphore, #tpu.memory_space<semaphore_mem>> -> memref<1x!tpu.dma_semaphore, #tpu.memory_space<semaphore_mem>>
    %110 = tpu.memref_squeeze %109 : memref<1x!tpu.dma_semaphore, #tpu.memory_space<semaphore_mem>> -> memref<!tpu.dma_semaphore, #tpu.memory_space<semaphore_mem>>
    tpu.wait_dma2 semaphore(%110 : memref<!tpu.dma_semaphore, #tpu.memory_space<semaphore_mem>>) src(%arg12 : memref<1024x128xbf16, #tpu.memory_space<any>>) dst(%arg16 : memref<1024x128xbf16, #tpu.memory_space<vmem>>)
    %c0_50 = arith.constant 0 : index
    %c0_51 = arith.constant 0 : index
    %111 = vector.load %arg16[%c0_50, %c0_51] : memref<1024x128xbf16, #tpu.memory_space<vmem>>, vector<1024x128xbf16>
    %cst_52 = arith.constant dense<0.000000e+00> : vector<8x128xf32>
    %112 = tpu.matmul %108, %111, %cst_52 {dimension_numbers = #tpu.dot_dimension_numbers<[1], [0], [0], [1], [0, 0, 1, 1], [], []>} : vector<8x1024xbf16>, vector<1024x128xbf16>, vector<8x128xf32> -> vector<8x128xf32>
    %c0_53 = arith.constant 0 : index
    %c0_54 = arith.constant 0 : index
    %113 = vector.load %arg13[%c0_53, %c0_54] : memref<1x128xf32, #tpu.memory_space<vmem>>, vector<1x128xf32>
    %114 = vector.broadcast %113 : vector<1x128xf32> to vector<8x128xf32>
    %115 = arith.addf %112, %114 : vector<8x128xf32>
    %116 = math.tanh %115 : vector<8x128xf32>
    %117 = arith.truncf %116 : vector<8x128xf32> to vector<8x128xbf16>
    %c0_55 = arith.constant 0 : index
    %c0_56 = arith.constant 0 : index
    %118 = vector.load %arg14[%c0_55, %c0_56] : memref<8x128xbf16, #tpu.memory_space<vmem>>, vector<8x128xbf16>
    tpu.vector_store %arg14[%c0_55, %c0_56], %117 {strides = array<i32>} : memref<8x128xbf16, #tpu.memory_space<vmem>>, vector<8x128xbf16>,
    return
  }
}

</mosaic_0001>

<bundles_post_ra>
// kernel: generator_forward.1
= control target key start
LH: loop header
LB: loop body
LE: loop exit
PB: predicated region body
PF: predicated region fallthrough
CT: control target
= control target key end

     0   :  { %19 = vsyncpa [#allocation6], 0  ;;  %s3497_s0 = inlined_call_operand.vmem [shape: bf16[8,128], index: 0, kind: input, shape index: {}]   ;;  %s3498_s1 = inlined_call_operand.hbm [shape: bf16[128,128], index: 1, kind: input, shape index: {}]   ;;  %s3499_s2 = inlined_call_operand.hbm [shape: f32[1,128], index: 2, kind: input, shape index: {}]   ;;  %s3500_s3 = inlined_call_operand.hbm [shape: bf16[128,256], index: 3, kind: input, shape index: {}]   ;;  %s3501_s4 = inlined_call_operand.vmem [shape: f32[1,256], index: 4, kind: input, shape index: {}]   ;;  %s3502_s5 = inlined_call_operand.vmem [shape: f32[1,256], index: 5, kind: input, shape index: {}]   ;;  %s3503_s6 = inlined_call_operand.hbm [shape: bf16[256,512], index: 6, kind: input, shape index: {}]   ;;  %s3504_s7 = inlined_call_operand.vmem [shape: f32[1,512], index: 7, kind: input, shape index: {}]   ;;  %s3505_s8 = inlined_call_operand.vmem [shape: f32[1,512], index: 8, kind: input, shape index: {}]   ;;  %s3506_s9 = inlined_call_operand.hbm [shape: bf16[512,1024], index: 9, kind: input, shape index: {}]   ;;  %s3507_s10 = inlined_call_operand.vmem [shape: f32[1,1024], index: 10, kind: input, shape index: {}]   ;;  %s3508_s11 = inlined_call_operand.vmem [shape: f32[1,1024], index: 11, kind: input, shape index: {}]   ;;  %s3509_s12 = inlined_call_operand.hbm [shape: bf16[1024,128], index: 12, kind: input, shape index: {}]   ;;  %s3510_s13 = inlined_call_operand.hbm [shape: f32[1,128], index: 13, kind: input, shape index: {}]   ;;  %s3511_s14 = inlined_call_operand.hbm [shape: bf16[8,128], index: 14, kind: output, shape index: {}]  }
   0x1   :  { %20 = vsyncpa [#allocation9], 0 }
   0x2   :  { %21 = vsyncpa [#allocation12], 0 }
   0x3   :  { %22 = vsyncpa [#allocation7], 0  ;;  %s2999_s29 = smov [#allocation8]   ;;  %s3000_s15 = smov [#allocation11]  }
   0x4   :  { %s43_s30 = sshll.u32 %s2999_s29, 4  ;;  %s68_s16 = sshll.u32 %s3000_s15, 4  ;;  %s44_s30 = int_to_ptr.vmem [resolvable:$true] %s43_s30  ;;  %s3097_s16 = int_to_ptr.vmem [resolvable:$true] %s68_s16 }
   0x5   :  { %s2833_s19 = scalar_lea.hbm %s3499_s2, 16 }
   0x6   :  { %p2834_p0 = scmp.ne.s32.totalorder %s3499_s2, %s2833_s19  ;;  %p2837_p1 = scmp.lt.u32.totalorder %s2833_s19, %s3499_s2 }
   0x8   :  { %p2839_p2 = pnand %p2837_p1, %p2834_p0 }
   0xa   :  { %2842 = shalt.err (!%p2839_p2)
}
   0xb   :  { %s2843_s24 = scalar_lea.vmem %s44_s30, 16  ;;  %s2847_s25 = scalar_lea.vmem %s44_s30, 32 }
   0xc   :  { %p2844_p3 = scmp.ne.s32.totalorder %s44_s30, %s2843_s24  ;;  %p2848_p4 = scmp.lt.s32.totalorder %s44_s30, %s44_s30 }
   0xd   :  { %p2849_p5 = scmp.lt.s32.totalorder %s2847_s25, %s2843_s24 }
   0xf   :  { %p2850_p6 = por %p2849_p5, %p2848_p4 }
  0x11   :  { %p2851_p7 = pnand %p2850_p6, %p2844_p3 }
  0x13   :  { %2854 = shalt.err (!%p2851_p7)
}
  0x14   :  { %46 = dma.hbm_to_vmem [thread:$0]  %s3499_s2, 16, %s44_s30, [#allocation9]  }
  0x15   :  { %s2855_s15 = scalar_lea.hbm %s3503_s6, 8192 }
  0x16   :  { %p2856_p8 = scmp.ne.s32.totalorder %s3503_s6, %s2855_s15  ;;  %p2859_p9 = scmp.lt.u32.totalorder %s2855_s15, %s3503_s6 }
  0x18   :  { %p2861_p10 = pnand %p2859_p9, %p2856_p8 }
  0x1a   :  { %2864 = shalt.err (!%p2861_p10)
}
  0x1b   :  { %s2865_s21 = scalar_lea.vmem %s3097_s16, 8192  ;;  %p2870_p12 = scmp.lt.s32.totalorder %s3097_s16, %s3097_s16 }
  0x1c   :  { %p2866_p11 = scmp.ne.s32.totalorder %s3097_s16, %s2865_s21  ;;  %p2871_p13 = scmp.lt.s32.totalorder %s2865_s21, %s2865_s21 }
  0x1e   :  { %p2872_p0 = por %p2871_p13, %p2870_p12 }
  0x20   :  { %p2873_p1 = pnand %p2872_p0, %p2866_p11 }
  0x22   :  { %2876 = shalt.err (!%p2873_p1)
}
  0x23   :  { %s3001_s2 = smov 256   ;;  %s3002_s30 = smov 16  }
  0x24   :  { %74 = dma.hbm_to_vmem [thread:$0]  %s3503_s6, 8192, %s3097_s16, [#allocation12], %s3001_s2, %s3001_s2, %s3002_s30  }
  0x25   :  { %s3003_s24 = smov [#allocation5]   ;;  %s2877_s28 = scalar_lea.hbm %s3498_s1, 1024 }
  0x26   :  { %s30_s25 = sshll.u32 %s3003_s24, 4  ;;  %p2878_p2 = scmp.ne.s32.totalorder %s3498_s1, %s2877_s28  ;;  %s31_s25 = int_to_ptr.vmem [resolvable:$true] %s30_s25 }
  0x27   :  { %p2881_p3 = scmp.lt.u32.totalorder %s2877_s28, %s3498_s1 }
  0x29   :  { %p2883_p4 = pnand %p2881_p3, %p2878_p2 }
  0x2b   :  { %2886 = shalt.err (!%p2883_p4)
}
  0x2c   :  { %s2887_s19 = scalar_lea.vmem %s31_s25, 1024  ;;  %p2892_p6 = scmp.lt.s32.totalorder %s31_s25, %s31_s25 }
  0x2d   :  { %p2888_p5 = scmp.ne.s32.totalorder %s31_s25, %s2887_s19  ;;  %p2893_p7 = scmp.lt.s32.totalorder %s2887_s19, %s2887_s19 }
  0x2f   :  { %p2894_p8 = por %p2893_p7, %p2892_p6 }
  0x31   :  { %p2895_p9 = pnand %p2894_p8, %p2888_p5 }
  0x33   :  { %2898 = shalt.err (!%p2895_p9)
}
  0x34   :  { %s3004_s6 = smov 64   ;;  %s3005_s16 = smov 4  }
  0x35   :  { %36 = dma.hbm_to_vmem [thread:$0]  %s3498_s1, 1024, %s31_s25, [#allocation6], %s3004_s6, %s3004_s6, %s3005_s16  }
  0x36   :  { %s3006_s2 = smov [#allocation10]   ;;  %s2899_s24 = scalar_lea.hbm %s3500_s3, 2048 }
  0x37   :  { %s52_s30 = sshll.u32 %s3006_s2, 4  ;;  %p2900_p10 = scmp.ne.s32.totalorder %s3500_s3, %s2899_s24  ;;  %s53_s30 = int_to_ptr.vmem [resolvable:$true] %s52_s30 }
  0x38   :  { %p2903_p11 = scmp.lt.u32.totalorder %s2899_s24, %s3500_s3 }
  0x3a   :  { %p2905_p12 = pnand %p2903_p11, %p2900_p10 }
  0x3c   :  { %2908 = shalt.err (!%p2905_p12)
}
  0x3d   :  { %s2909_s15 = scalar_lea.vmem %s53_s30, 2048  ;;  %p2914_p0 = scmp.lt.s32.totalorder %s53_s30, %s53_s30 }
  0x3e   :  { %p2910_p13 = scmp.ne.s32.totalorder %s53_s30, %s2909_s15  ;;  %p2915_p1 = scmp.lt.s32.totalorder %s2909_s15, %s2909_s15 }
  0x40   :  { %p2916_p2 = por %p2915_p1, %p2914_p0 }
  0x42   :  { %p2917_p3 = pnand %p2916_p2, %p2910_p13 }
  0x44   :  { %2920 = shalt.err (!%p2917_p3)
}
  0x45   :  { %s3007_s1 = smov 128   ;;  %s3008_s25 = smov 8  }
  0x46   :  { %58 = dma.hbm_to_vmem [thread:$0]  %s3500_s3, 2048, %s53_s30, [#allocation9], %s3007_s1, %s3007_s1, %s3008_s25  }
  0x47   :  { %s3009_s19 = smov [#allocation13]   ;;  %s2921_s22 = scalar_lea.hbm %s3510_s13, 16 }
  0x48   :  { %s89_s20 = sshll.u32 %s3009_s19, 4  ;;  %p2922_p4 = scmp.ne.s32.totalorder %s3510_s13, %s2921_s22  ;;  %s90_s20 = int_to_ptr.vmem [resolvable:$true] %s89_s20 }
  0x49   :  { %p2925_p5 = scmp.lt.u32.totalorder %s2921_s22, %s3510_s13 }
  0x4b   :  { %p2927_p6 = pnand %p2925_p5, %p2922_p4 }
  0x4d   :  { %2930 = shalt.err (!%p2927_p6)
}
  0x4e   :  { %s2931_s28 = scalar_lea.vmem %s90_s20, 16  ;;  %s2935_s3 = scalar_lea.vmem %s90_s20, 32 }
  0x4f   :  { %p2932_p7 = scmp.ne.s32.totalorder %s90_s20, %s2931_s28  ;;  %p2936_p8 = scmp.lt.s32.totalorder %s90_s20, %s90_s20 }
  0x50   :  { %p2937_p9 = scmp.lt.s32.totalorder %s2935_s3, %s2931_s28 }
  0x52   :  { %p2938_p10 = por %p2937_p9, %p2936_p8 }
  0x54   :  { %p2939_p11 = pnand %p2938_p10, %p2932_p7 }
  0x56   :  { %2942 = shalt.err (!%p2939_p11)
}
  0x57   :  { %92 = dma.hbm_to_vmem [thread:$0]  %s3510_s13, 16, %s90_s20, [#allocation12]  }
  0x58   :  { %2987 = dma.done.wait [#allocation6], 1024  }
  0x59   :  { %2988 = vsyncadd [#allocation6], 4294966272 }
  0x5a   :  { %2989 = dma.done.wait [#allocation9], 2064  }
  0x5b   :  { %2990 = vsyncadd [#allocation9], 4294965232 }
  0x5c   :  { %2991 = dma.done.wait [#allocation12], 8208  }
  0x5d   :  { %2992 = vsyncadd [#allocation12], 4294959088  ;;  %s113_s15 = sld [smem:[#allocation0]]   ;;  %s3010_s17 = smov 1024   ;;  %v3011_v0 = vmov 0.0   ;;  %vm3012_vm0 = vmmov 0  }
  0x5e   :  { %125 = sst [smem:[#allocation16]] %s3010_s17  ;;  %2616 = vmatprep.subr.bf16.mxu0 %v3011_v0  ;;  %2632 = vmatprep.mubr.msk.bf16.mxu0 %vm3012_vm0, %v3011_v0  ;;  %s3013_s13 = smov [#allocation2]   ;;  %v3018_v26 = vmov 0  }
  0x5f   :  { %127 = sst [smem:[#allocation16 + $0x1]] %s3010_s17  ;;  %s121_s18 = sshll.u32 %s3013_s13, 4  ;;  %399 = vmatprep.mubr.bf16.mxu1 %v3018_v26  ;;  %s122_s18 = int_to_ptr.vmem [resolvable:$true] %s121_s18 }
  0x60   :  { %129 = sst [smem:[#allocation16 + $0x2]] %s3008_s25  ;;  %s3014_s19 = smov 2  }
  0x61   :  { %131 = sst [smem:[#allocation16 + $0x3]] %s3004_s6  ;;  %s3015_s21 = smov 512  }
  0x62   :  { %133 = sst [smem:[#allocation16 + $0x4]] %s3007_s1  ;;  %s3016_s22 = smov [#allocation4]  }
  0x63   :  { %135 = sst [smem:[#allocation16 + $0x5]] %s3014_s19  ;;  %s2425_s20 = sshll.u32 %s113_s15, 26 }
  0x64   :  { %137 = sst [smem:[#allocation16 + $0x6]] %s3015_s21  ;;  %s2426_s2 = sadd.s32 134217728, %s2425_s20 }
  0x65   :  { %139 = sst [smem:[#allocation16 + $0x7]] %s3004_s6  ;;  %s3017_s23 = smov [#allocation15]  }
  0x66   :  { %141 = sst [smem:[#allocation16 + $0x8]] %s3005_s16  ;;  %s2943_s3 = scalar_lea.hbm %s3509_s12, 8192 }
  0x67   :  { %143 = dma.general %s3506_s9, 32768, %s122_s18, %s3016_s22, %s3017_s23, [#allocation16], %s2426_s2, 0  }
  0x68   :  { %v2675_v1 = vld [vmem:[#allocation5] sm:$0xff]   ;;  %v2676_v2 = vld [vmem:[#allocation5 + $0x8] sm:$0xff]   ;;  %v2677_v3 = vld [vmem:[#allocation5 + $0x10] sm:$0xff]   ;;  %p2944_p12 = scmp.ne.s32.totalorder %s3509_s12, %s2943_s3  ;;  %p2947_p13 = scmp.lt.u32.totalorder %s2943_s3, %s3509_s12 }
  0x69   :  { %2617 = vmatpush3.bf16.msra.mxu0 %v2675_v1  ;;  %v2683_v4 = vld [vmem:[#allocation10 + $0x4] ss:$8 sps:$4 sm:$0xff]   ;;  %v2685_v5 = vld [vmem:[#allocation10] ss:$8 sps:$4 sm:$0xff]   ;;  %v2678_v6 = vld [vmem:[#allocation5 + $0x18] sm:$0xff]  }
  0x6a   :  { %2618 = vmatprep.subr.bf16.mxu0 %v3011_v0  ;;  %v2686_v7 = vld [vmem:[#allocation10 + $0x14] ss:$8 sps:$4 sm:$0xff]   ;;  %367 = vmatprep.subr.bf16.mxu1 %v2683_v4  ;;  %v2688_v8 = vld [vmem:[#allocation10 + $0x10] ss:$8 sps:$4 sm:$0xff]   ;;  %v2689_v9 = vld [vmem:[#allocation10 + $0x24] ss:$8 sps:$4 sm:$0xff]   ;;  %p2949_p0 = pnand %p2947_p13, %p2944_p12 }
  0x6b   :  { %368 = vmatpush1.bf16.msra.mxu1 %v2685_v5  ;;  %v2679_v10 = vld [vmem:[#allocation5 + $0x20] sm:$0xff]   ;;  %v2680_v11 = vld [vmem:[#allocation5 + $0x28] sm:$0xff]   ;;  %v2694_v14 = vld [vmem:[#allocation10 + $0x30] ss:$8 sps:$4 sm:$0xff]  }
  0x6c   :  { %369 = vmatprep.subr.bf16.mxu1 %v2686_v7  ;;  %v2691_v12 = vld [vmem:[#allocation10 + $0x20] ss:$8 sps:$4 sm:$0xff]   ;;  %v2692_v13 = vld [vmem:[#allocation10 + $0x34] ss:$8 sps:$4 sm:$0xff]   ;;  %v2695_v15 = vld [vmem:[#allocation10 + $0x44] ss:$8 sps:$4 sm:$0xff]  }
  0x6d   :  { %2619 = vmatpush3.bf16.msra.mxu0 %v2676_v2  ;;  %v2681_v16 = vld [vmem:[#allocation5 + $0x30] sm:$0xff]   ;;  %v2697_v17 = vld [vmem:[#allocation10 + $0x40] ss:$8 sps:$4 sm:$0xff]   ;;  %v2682_v19 = vld [vmem:[#allocation5 + $0x38] sm:$0xff]  }
  0x6e   :  { %2620 = vmatprep.subr.bf16.mxu0 %v3011_v0  ;;  %v2698_v18 = vld [vmem:[#allocation10 + $0x54] ss:$8 sps:$4 sm:$0xff]   ;;  %v2700_v20 = vld [vmem:[#allocation10 + $0x50] ss:$8 sps:$4 sm:$0xff]   ;;  %v2701_v22 = vld [vmem:[#allocation10 + $0x64] ss:$8 sps:$4 sm:$0xff]  }
  0x6f   :  { %370 = vmatpush1.bf16.msra.mxu1 %v2688_v8  ;;  %v156_v21 = vld [vmem:[%s3497_s0] sm:$0xf]  ;;  %v2706_v25 = vld [vmem:[#allocation10 + $0x70] ss:$8 sps:$4 sm:$0xff]   ;;  %v2709_v28 = vld [vmem:[#allocation11 + $0x4] ss:$16 sps:$4 sm:$0xff]  }
  0x70   :  { %371 = vmatprep.subr.bf16.mxu1 %v2689_v9  ;;  %v2703_v23 = vld [vmem:[#allocation10 + $0x60] ss:$8 sps:$4 sm:$0xff]   ;;  %v2704_v24 = vld [vmem:[#allocation10 + $0x74] ss:$8 sps:$4 sm:$0xff]  }
  0x71   :  { %2621 = vmatpush3.bf16.msra.mxu0 %v2677_v3  ;;  %v2707_v27 = vld [vmem:[#allocation11] ss:$16 sps:$4 sm:$0xff]   ;;  %v2712_v29 = vld [vmem:[#allocation11 + $0xc] ss:$16 sps:$4 sm:$0xff]   ;;  %v2715_v30 = vld [vmem:[#allocation11 + $0x24] ss:$16 sps:$4 sm:$0xff]  }
  0x72   :  { %2622 = vmatprep.subr.bf16.mxu0 %v3011_v0  ;;  %v2713_v31 = vld [vmem:[#allocation11 + $0x20] ss:$16 sps:$4 sm:$0xff]   ;;  %v2427_v32 = vld [vmem:[#allocation8] ss:$0 sm:$0xff]  ;;  %v2710_v40 = vld [vmem:[#allocation11 + $0x8] ss:$16 sps:$4 sm:$0xff]  }
  0x73   :  { %372 = vmatpush1.bf16.msra.mxu1 %v2691_v12  ;;  %v2718_v42 = vld [vmem:[#allocation11 + $0x2c] ss:$16 sps:$4 sm:$0xff]   ;;  %v2716_v43 = vld [vmem:[#allocation11 + $0x28] ss:$16 sps:$4 sm:$0xff]   ;;  %v2721_v44 = vld [vmem:[#allocation11 + $0x44] ss:$16 sps:$4 sm:$0xff]  }
  0x74   :  { %373 = vmatprep.subr.bf16.mxu1 %v2692_v13  ;;  %v2724_v45 = vld [vmem:[#allocation11 + $0x4c] ss:$16 sps:$4 sm:$0xff]   ;;  %v2719_v46 = vld [vmem:[#allocation11 + $0x40] ss:$16 sps:$4 sm:$0xff]   ;;  %v2722_v47 = vld [vmem:[#allocation11 + $0x48] ss:$16 sps:$4 sm:$0xff]  }
  0x75   :  { %2623 = vmatpush3.bf16.msra.mxu0 %v2678_v6  ;;  %v2727_v48 = vld [vmem:[#allocation11 + $0x64] ss:$16 sps:$4 sm:$0xff]   ;;  %v2730_v49 = vld [vmem:[#allocation11 + $0x6c] ss:$16 sps:$4 sm:$0xff]   ;;  %v2725_v50 = vld [vmem:[#allocation11 + $0x60] ss:$16 sps:$4 sm:$0xff]  }
  0x76   :  { %2624 = vmatprep.subr.bf16.mxu0 %v3011_v0  ;;  %v2728_v51 = vld [vmem:[#allocation11 + $0x68] ss:$16 sps:$4 sm:$0xff]   ;;  %v2733_v52 = vld [vmem:[#allocation11 + $0x84] ss:$16 sps:$4 sm:$0xff]   ;;  %v2736_v53 = vld [vmem:[#allocation11 + $0x8c] ss:$16 sps:$4 sm:$0xff]  }
  0x77   :  { %374 = vmatpush1.bf16.msra.mxu1 %v2694_v14  ;;  %v2731_v54 = vld [vmem:[#allocation11 + $0x80] ss:$16 sps:$4 sm:$0xff]   ;;  %v2734_v55 = vld [vmem:[#allocation11 + $0x88] ss:$16 sps:$4 sm:$0xff]   ;;  %v2739_v56 = vld [vmem:[#allocation11 + $0xa4] ss:$16 sps:$4 sm:$0xff]  }
  0x78   :  { %375 = vmatprep.subr.bf16.mxu1 %v2695_v15  ;;  %v2742_v57 = vld [vmem:[#allocation11 + $0xac] ss:$16 sps:$4 sm:$0xff]   ;;  %v2737_v58 = vld [vmem:[#allocation11 + $0xa0] ss:$16 sps:$4 sm:$0xff]   ;;  %v2740_v59 = vld [vmem:[#allocation11 + $0xa8] ss:$16 sps:$4 sm:$0xff]  }
  0x79   :  { %2625 = vmatpush3.bf16.msra.mxu0 %v2679_v10  ;;  %v2745_v60 = vld [vmem:[#allocation11 + $0xc4] ss:$16 sps:$4 sm:$0xff]   ;;  %v2748_v61 = vld [vmem:[#allocation11 + $0xcc] ss:$16 sps:$4 sm:$0xff]   ;;  %v2743_v62 = vld [vmem:[#allocation11 + $0xc0] ss:$16 sps:$4 sm:$0xff]  }
  0x7a   :  { %2626 = vmatprep.subr.bf16.mxu0 %v3011_v0  ;;  %v2746_v63 = vld [vmem:[#allocation11 + $0xc8] ss:$16 sps:$4 sm:$0xff]   ;;  %v2754_v1 = vld [vmem:[#allocation11 + $0xec] ss:$16 sps:$4 sm:$0xff]   ;;  %v2749_v2 = vld [vmem:[#allocation11 + $0xe0] ss:$16 sps:$4 sm:$0xff]  }
  0x7b   :  { %376 = vmatpush1.bf16.msra.mxu1 %v2697_v17  ;;  %v2752_v3 = vld [vmem:[#allocation11 + $0xe8] ss:$16 sps:$4 sm:$0xff]   ;;  %v2757_v4 = vld [vmem:[#allocation11 + $0x104] ss:$16 sps:$4 sm:$0xff]   ;;  %v2760_v5 = vld [vmem:[#allocation11 + $0x10c] ss:$16 sps:$4 sm:$0xff]  }
  0x7c   :  { %377 = vmatprep.subr.bf16.mxu1 %v2698_v18  ;;  %v2755_v6 = vld [vmem:[#allocation11 + $0x100] ss:$16 sps:$4 sm:$0xff]   ;;  %v2758_v7 = vld [vmem:[#allocation11 + $0x108] ss:$16 sps:$4 sm:$0xff]   ;;  %v2763_v8 = vld [vmem:[#allocation11 + $0x124] ss:$16 sps:$4 sm:$0xff]  }
  0x7d   :  { %2627 = vmatpush3.bf16.msra.mxu0 %v2680_v11  ;;  %v2766_v9 = vld [vmem:[#allocation11 + $0x12c] ss:$16 sps:$4 sm:$0xff]   ;;  %v2761_v10 = vld [vmem:[#allocation11 + $0x120] ss:$16 sps:$4 sm:$0xff]   ;;  %v2764_v11 = vld [vmem:[#allocation11 + $0x128] ss:$16 sps:$4 sm:$0xff]  }
  0x7e   :  { %2628 = vmatprep.subr.bf16.mxu0 %v3011_v0  ;;  %v2769_v12 = vld [vmem:[#allocation11 + $0x144] ss:$16 sps:$4 sm:$0xff]   ;;  %v2772_v13 = vld [vmem:[#allocation11 + $0x14c] ss:$16 sps:$4 sm:$0xff]   ;;  %v2767_v14 = vld [vmem:[#allocation11 + $0x140] ss:$16 sps:$4 sm:$0xff]  }
  0x7f   :  { %378 = vmatpush1.bf16.msra.mxu1 %v2700_v20  ;;  %v2770_v15 = vld [vmem:[#allocation11 + $0x148] ss:$16 sps:$4 sm:$0xff]   ;;  %v2778_v17 = vld [vmem:[#allocation11 + $0x16c] ss:$16 sps:$4 sm:$0xff]   ;;  %v2773_v18 = vld [vmem:[#allocation11 + $0x160] ss:$16 sps:$4 sm:$0xff]  }
  0x80   :  { %379 = vmatprep.subr.bf16.mxu1 %v2701_v22  ;;  %v2779_v20 = vld [vmem:[#allocation11 + $0x180] ss:$16 sps:$4 sm:$0xff]   ;;  %v2782_v22 = vld [vmem:[#allocation11 + $0x188] ss:$16 sps:$4 sm:$0xff]  }
  0x81   :  { %2629 = vmatpush3.bf16.msra.mxu0 %v2681_v16  ;;  %v2775_v16 = vld [vmem:[#allocation11 + $0x164] ss:$16 sps:$4 sm:$0xff]   ;;  %v2785_v26 = vld [vmem:[#allocation11 + $0x1a0] ss:$16 sps:$4 sm:$0xff]  }
  0x82   :  { %2630 = vmatprep.subr.bf16.mxu0 %v3011_v0  ;;  %v2751_v0 = vld [vmem:[#allocation11 + $0xe4] ss:$16 sps:$4 sm:$0xff]  }
  0x83   :  { %380 = vmatpush1.bf16.msra.mxu1 %v2703_v23  ;;  %v2784_v23 = vld [vmem:[#allocation11 + $0x18c] ss:$16 sps:$4 sm:$0xff]  }
  0x84   :  { %381 = vmatprep.subr.bf16.mxu1 %v2704_v24  ;;  %v2787_v24 = vld [vmem:[#allocation11 + $0x1a4] ss:$16 sps:$4 sm:$0xff]  }
  0x85   :  { %2631 = vmatpush3.bf16.msra.mxu0 %v2682_v19  ;;  %v2776_v19 = vld [vmem:[#allocation11 + $0x168] ss:$16 sps:$4 sm:$0xff]  }
  0x86   :  { %898 = vmatprep.subr.bf16.mxu0 %v2709_v28  ;;  %v2793_v28 = vld [vmem:[#allocation11 + $0x1c4] ss:$16 sps:$4 sm:$0xff]  }
  0x87   :  { %382 = vmatpush1.bf16.msra.mxu1 %v2706_v25  ;;  %v2790_v25 = vld [vmem:[#allocation11 + $0x1ac] ss:$16 sps:$4 sm:$0xff]  }
  0x88   :  { %2633 = vmatmul.mubr.bf16.vlgmr.msra.gmra.mrb[0].mxu0 %v156_v21  ;;  %939 = vmatprep.subr.bf16.mxu1 %v2712_v29  ;;  %v2781_v21 = vld [vmem:[#allocation11 + $0x184] ss:$16 sps:$4 sm:$0xff]   ;;  %v2796_v29 = vld [vmem:[#allocation11 + $0x1cc] ss:$16 sps:$4 sm:$0xff]  }
  0x89   :  { %899 = vmatpush1.bf16.msra.mxu0 %v2707_v27  ;;  %v2788_v27 = vld [vmem:[#allocation11 + $0x1a8] ss:$16 sps:$4 sm:$0xff]  }
  0x8a   :  { %900 = vmatprep.subr.bf16.mxu0 %v2715_v30  ;;  %v2791_v30 = vld [vmem:[#allocation11 + $0x1c0] ss:$16 sps:$4 sm:$0xff]  }
  0x8d   :  { %901 = vmatpush1.bf16.msra.mxu0 %v2713_v31  ;;  %v2794_v31 = vld [vmem:[#allocation11 + $0x1c8] ss:$16 sps:$4 sm:$0xff]  }
  0x8e   :  { %902 = vmatprep.subr.bf16.mxu0 %v2721_v44 }
  0x91   :  { %903 = vmatpush1.bf16.msra.mxu0 %v2719_v46 }
  0x92   :  { %904 = vmatprep.subr.bf16.mxu0 %v2727_v48 }
  0x95   :  { %905 = vmatpush1.bf16.msra.mxu0 %v2725_v50 }
  0x96   :  { %906 = vmatprep.subr.bf16.mxu0 %v2733_v52 }
  0x99   :  { %907 = vmatpush1.bf16.msra.mxu0 %v2731_v54 }
  0x9a   :  { %908 = vmatprep.subr.bf16.mxu0 %v2739_v56 }
  0x9d   :  { %909 = vmatpush1.bf16.msra.mxu0 %v2737_v58 }
  0x9e   :  { %910 = vmatprep.subr.bf16.mxu0 %v2745_v60 }
  0xa1   :  { %911 = vmatpush1.bf16.msra.mxu0 %v2743_v62 }
  0xa2   :  { %912 = vmatprep.subr.bf16.mxu0 %v2751_v0 }
  0xa5   :  { %913 = vmatpush1.bf16.msra.mxu0 %v2749_v2 }
  0xa6   :  { %914 = vmatprep.subr.bf16.mxu0 %v2757_v4 }
  0xa9   :  { %915 = vmatpush1.bf16.msra.mxu0 %v2755_v6 }
  0xaa   :  { %916 = vmatprep.subr.bf16.mxu0 %v2763_v8 }
  0xad   :  { %917 = vmatpush1.bf16.msra.mxu0 %v2761_v10 }
  0xae   :  { %918 = vmatprep.subr.bf16.mxu0 %v2769_v12 }
  0xb1   :  { %919 = vmatpush1.bf16.msra.mxu0 %v2767_v14 }
  0xb2   :  { %920 = vmatprep.subr.bf16.mxu0 %v2775_v16 }
  0xb5   :  { %921 = vmatpush1.bf16.msra.mxu0 %v2773_v18 }
  0xb6   :  { %922 = vmatprep.subr.bf16.mxu0 %v2781_v21 }
  0xb9   :  { %923 = vmatpush1.bf16.msra.mxu0 %v2779_v20 }
  0xba   :  { %924 = vmatprep.subr.bf16.mxu0 %v2787_v24 }
  0xbd   :  { %925 = vmatpush1.bf16.msra.mxu0 %v2785_v26 }
  0xbe   :  { %926 = vmatprep.subr.bf16.mxu0 %v2793_v28 }
  0xc1   :  { %927 = vmatpush1.bf16.msra.mxu0 %v2791_v30 }
 0x15b   :  { %v262_v33 = vpop.f32.mrb[0].mxu0 }
 0x15c   :  { %v263_v34 = vadd.f32 %v2427_v32, %v262_v33  ;;  %v2634_v35 = vpop.f32.mrb[1].mxu0  ;;  %v2799_v32 = vld [vmem:[#allocation11 + $0x1e4] ss:$16 sps:$4 sm:$0xff]   ;;  %v2802_v33 = vld [vmem:[#allocation11 + $0x1ec] ss:$16 sps:$4 sm:$0xff]  }
 0x15d   :  { %v265_v36 = vpop.f32.mrb[2].mxu0  ;;  %v2800_v35 = vld [vmem:[#allocation11 + $0x1e8] ss:$16 sps:$4 sm:$0xff]   ;;  %928 = vmatprep.subr.bf16.mxu0 %v2799_v32 }
 0x15e   :  { %v268_v37 = vmul.f32 0.2, %v263_v34  ;;  %v2635_v38 = vpop.f32.mrb[3].mxu0 }
 0x160   :  { %v269_v39 = vmax.f32 %v263_v34, %v268_v37  ;;  %v2797_v34 = vld [vmem:[#allocation11 + $0x1e0] ss:$16 sps:$4 sm:$0xff]  }
 0x161   :  { %929 = vmatpush1.bf16.msra.mxu0 %v2797_v34 }
 0x162   :  { %v270_v41 = vpack.c.bf16 %v269_v39, %v269_v39 }
 0x164   :  { %400 = vmatmul.mubr.bf16.vlgmr.msra.gmra.mrb[0].mxu1 %v270_v41 }
 0x165   :  { %940 = vmatpush1.bf16.msra.mxu1 %v2710_v40 }
 0x166   :  { %941 = vmatprep.subr.bf16.mxu1 %v2718_v42 }
 0x169   :  { %942 = vmatpush1.bf16.msra.mxu1 %v2716_v43 }
 0x16a   :  { %943 = vmatprep.subr.bf16.mxu1 %v2724_v45 }
 0x16d   :  { %944 = vmatpush1.bf16.msra.mxu1 %v2722_v47 }
 0x16e   :  { %945 = vmatprep.subr.bf16.mxu1 %v2730_v49 }
 0x171   :  { %946 = vmatpush1.bf16.msra.mxu1 %v2728_v51 }
 0x172   :  { %947 = vmatprep.subr.bf16.mxu1 %v2736_v53 }
 0x175   :  { %948 = vmatpush1.bf16.msra.mxu1 %v2734_v55 }
 0x176   :  { %949 = vmatprep.subr.bf16.mxu1 %v2742_v57 }
 0x179   :  { %950 = vmatpush1.bf16.msra.mxu1 %v2740_v59 }
 0x17a   :  { %951 = vmatprep.subr.bf16.mxu1 %v2748_v61 }
 0x17d   :  { %952 = vmatpush1.bf16.msra.mxu1 %v2746_v63 }
 0x17e   :  { %953 = vmatprep.subr.bf16.mxu1 %v2754_v1 }
 0x181   :  { %954 = vmatpush1.bf16.msra.mxu1 %v2752_v3 }
 0x182   :  { %955 = vmatprep.subr.bf16.mxu1 %v2760_v5 }
 0x185   :  { %956 = vmatpush1.bf16.msra.mxu1 %v2758_v7 }
 0x186   :  { %957 = vmatprep.subr.bf16.mxu1 %v2766_v9  ;;  %v452_v9 = vlaneseq }
 0x188   :  { %v3202_v14 = vshrl.u32 %v452_v9, 7 }
 0x189   :  { %958 = vmatpush1.bf16.msra.mxu1 %v2764_v11 }
 0x18a   :  { %959 = vmatprep.subr.bf16.mxu1 %v2772_v13  ;;  %v3205_v16 = vsub.s32 0, %v3202_v14  ;;  %v3211_v18 = vsub.s32 1, %v3202_v14 }
 0x18d   :  { %960 = vmatpush1.bf16.msra.mxu1 %v2770_v15 }
 0x18e   :  { %961 = vmatprep.subr.bf16.mxu1 %v2778_v17  ;;  %v408_v17 = vld [vmem:[%s3501_s4] sm:$0x3] }
 0x18f   :  { %v455_v21 = vrot.slane %v408_v17, %v3205_v16 }
 0x191   :  { %962 = vmatpush1.bf16.msra.mxu1 %v2776_v19  ;;  %v3019_v19 = vmov 1966171168  }
 0x192   :  { %963 = vmatprep.subr.bf16.mxu1 %v2784_v23  ;;  %v470_v20 = vunpack.c.l.s4 %v3019_v19 }
 0x194   :  { %v471_v24 = vunpack.c.0.s8 %v470_v20 }
 0x195   :  { %964 = vmatpush1.bf16.msra.mxu1 %v2782_v22  ;;  %v459_v22 = vrot.slane %v408_v17, %v3211_v18 }
 0x196   :  { %965 = vmatprep.subr.bf16.mxu1 %v2790_v25  ;;  %v3216_v30 = vsub.s32 %v471_v24, %v3202_v14 }
 0x199   :  { %966 = vmatpush1.bf16.msra.mxu1 %v2788_v27 }
 0x19a   :  { %967 = vmatprep.subr.bf16.mxu1 %v2796_v29 }
 0x19d   :  { %968 = vmatpush1.bf16.msra.mxu1 %v2794_v31 }
 0x19e   :  { %969 = vmatprep.subr.bf16.mxu1 %v2802_v33  ;;  %v409_v33 = vld [vmem:[%s3502_s5] sm:$0x3]  ;;  %s3020_s5 = smov [#allocation3]  }
 0x19f   :  { %s152_s26 = sshll.u32 %s3020_s5, 4  ;;  %s153_s26 = int_to_ptr.vmem [resolvable:$true] %s152_s26 }
 0x1a1   :  { %970 = vmatpush1.bf16.msra.mxu1 %v2800_v35 }
 0x237   :  { %v3190_v36 = vpop.f32.mrb[0].mxu1 }
 0x238   :  { %v410_v37 = vrot.slane %v3190_v36, 4  ;;  %v425_v38 = vmul.f32 %v3190_v36, %v3190_v36  ;;  %v3195_v39 = vpop.f32.mrb[1].mxu1 }
 0x239   :  { %v416_v40 = vrot.slane %v3195_v39, 4  ;;  %v426_v41 = vmul.f32 %v3195_v39, %v3195_v39  ;;  %v405_v42 = vpop.f32.mrb[2].mxu1 }
 0x23a   :  { %v411_v43 = vadd.f32 %v410_v37, %v3190_v36  ;;  %v427_v44 = vrot.slane %v425_v38, 4  ;;  %v406_v45 = vpop.f32.mrb[3].mxu1 }
 0x23b   :  { %v417_v46 = vadd.f32 %v416_v40, %v3195_v39  ;;  %v433_v47 = vrot.slane %v426_v41, 4 }
 0x23c   :  { %v412_v48 = vrot.slane %v411_v43, 2  ;;  %v428_v49 = vadd.f32 %v427_v44, %v425_v38 }
 0x23d   :  { %v418_v50 = vrot.slane %v417_v46, 2  ;;  %v434_v51 = vadd.f32 %v433_v47, %v426_v41 }
 0x23e   :  { %v413_v52 = vadd.f32 %v412_v48, %v411_v43  ;;  %v429_v53 = vrot.slane %v428_v49, 2 }
 0x23f   :  { %v419_v54 = vadd.f32 %v418_v50, %v417_v46  ;;  %v435_v55 = vrot.slane %v434_v51, 2 }
 0x240   :  { %v414_v56 = vrot.slane %v413_v52, 1  ;;  %v430_v57 = vadd.f32 %v429_v53, %v428_v49 }
 0x241   :  { %v420_v58 = vrot.slane %v419_v54, 1  ;;  %v436_v59 = vadd.f32 %v435_v55, %v434_v51 }
 0x242   :  { %v415_v60 = vadd.f32 %v414_v56, %v413_v52  ;;  %v431_v61 = vrot.slane %v430_v57, 1 }
 0x243   :  { %v421_v62 = vadd.f32 %v420_v58, %v419_v54  ;;  %v437_v63 = vrot.slane %v436_v59, 1 }
 0x244   :  { %v423_v0 = vmul.f32 0.125, %v415_v60  ;;  %v432_v1 = vadd.f32 %v431_v61, %v430_v57 }
 0x245   :  { %v424_v2 = vmul.f32 0.125, %v421_v62  ;;  %v438_v3 = vadd.f32 %v437_v63, %v436_v59 }
 0x246   :  { %v439_v4 = vmul.f32 0.125, %v432_v1  ;;  %v441_v5 = vmul.f32 %v423_v0, %v423_v0 }
 0x247   :  { %v440_v6 = vmul.f32 0.125, %v438_v3  ;;  %v442_v7 = vmul.f32 %v424_v2, %v424_v2 }
 0x248   :  { %v443_v8 = vsub.f32 %v439_v4, %v441_v5 }
 0x249   :  { %v444_v10 = vsub.f32 %v440_v6, %v442_v7 }
 0x24a   :  { %v445_v11 = vmax.f32 %v443_v8, 0.0 }
 0x24b   :  { %v446_v12 = vmax.f32 %v444_v10, 0.0 }
 0x24c   :  { %v447_v13 = vadd.f32 0.8, %v445_v11 }
 0x24d   :  { %v448_v15 = vadd.f32 0.8, %v446_v12 }
 0x24e   :  { %2803 = vrsqrt.f32 %v447_v13 }
 0x24f   :  { %2805 = vrsqrt.f32 %v448_v15 }
 0x258   :  { %v2804_v23 = vpop.eup %2803 }
 0x259   :  { %v2806_v25 = vpop.eup %2805  ;;  %v462_v26 = vmul.f32 %v2804_v23, %v455_v21 }
 0x25a   :  { %v463_v27 = vmul.f32 %v2806_v25, %v459_v22 }
 0x25b   :  { %v464_v28 = vmul.f32 %v462_v26, %v423_v0  ;;  %v488_v34 = vrot.slane %v462_v26, %v3205_v16 }
 0x25c   :  { %v465_v29 = vmul.f32 %v463_v27, %v424_v2  ;;  %v492_v35 = vrot.slane %v463_v27, %v3205_v16 }
 0x25d   :  { %v493_v40 = vmul.f32 %v488_v34, %v3190_v36 }
 0x25e   :  { %v468_v31 = vcombine.low %v464_v28, %v465_v29  ;;  %v494_v41 = vmul.f32 %v492_v35, %v3195_v39 }
 0x260   :  { %v475_v32 = vrot.slane %v468_v31, %v3216_v30 }
 0x262   :  { %v482_v37 = vrot.slane %v475_v32, %v3216_v30 }
 0x264   :  { %v484_v38 = vsub.f32 %v409_v33, %v482_v37 }
 0x266   :  { %v503_v42 = vrot.slane %v484_v38, %v3211_v18  ;;  %v499_v43 = vrot.slane %v484_v38, %v3205_v16 }
 0x268   :  { %v507_v44 = vadd.f32 %v503_v42, %v494_v41  ;;  %v506_v45 = vadd.f32 %v499_v43, %v493_v40 }
 0x26a   :  { %v509_v46 = vmul.f32 0.2, %v507_v44  ;;  %v508_v47 = vmul.f32 0.2, %v506_v45 }
 0x26c   :  { %v511_v48 = vmax.f32 %v507_v44, %v509_v46  ;;  %v510_v49 = vmax.f32 %v506_v45, %v508_v47 }
 0x26e   :  { %v513_v50 = vpack.c.bf16 %v511_v48, %v511_v48  ;;  %v512_v51 = vpack.c.bf16 %v510_v49, %v510_v49 }
 0x270   :  { %930 = vmatprep.mubr.bf16.mxu0 %v513_v50  ;;  %971 = vmatprep.mubr.bf16.mxu1 %v513_v50 }
 0x271   :  { %931 = vmatmul.mubr.bf16.vlgmr.msra.gmra.mrb[4].mxu0 %v512_v51  ;;  %972 = vmatmul.mubr.bf16.vlgmr.msra.gmra.mrb[4].mxu1 %v512_v51 }
 0x272   :  { %2952 = shalt.err (!%p2949_p0)  }
 0x273   :  { %s2953_s13 = scalar_lea.vmem %s153_s26, 8192  ;;  %p2958_p2 = scmp.lt.s32.totalorder %s153_s26, %s153_s26 }
 0x274   :  { %p2954_p1 = scmp.ne.s32.totalorder %s153_s26, %s2953_s13  ;;  %p2959_p3 = scmp.lt.s32.totalorder %s2953_s13, %s2953_s13 }
 0x276   :  { %p2960_p4 = por %p2959_p3, %p2958_p2 }
 0x278   :  { %p2961_p5 = pnand %p2960_p4, %p2954_p1 }
 0x27a   :  { %2964 = shalt.err (!%p2961_p5)  }
 0x27b   :  { %155 = dma.hbm_to_vmem [thread:$0]  %s3509_s12, 8192, %s153_s26, [#allocation4 + $0x1] }
 0x344   :  { %v3241_v36 = vpop.f32.mrb[4].mxu0  ;;  %v3243_v39 = vpop.f32.mrb[4].mxu1 }
 0x345   :  { %v982_v52 = vrot.slane %v3241_v36, 4  ;;  %v1010_v53 = vmul.f32 %v3241_v36, %v3241_v36  ;;  %v994_v54 = vrot.slane %v3243_v39, 4  ;;  %v1012_v55 = vmul.f32 %v3243_v39, %v3243_v39  ;;  %v3251_v56 = vpop.f32.mrb[5].mxu0  ;;  %v3253_v57 = vpop.f32.mrb[5].mxu1 }
 0x346   :  { %v988_v58 = vrot.slane %v3251_v56, 4  ;;  %v1011_v59 = vmul.f32 %v3251_v56, %v3251_v56  ;;  %v1000_v60 = vrot.slane %v3253_v57, 4  ;;  %v1013_v61 = vmul.f32 %v3253_v57, %v3253_v57  ;;  %v936_v62 = vpop.f32.mrb[6].mxu0  ;;  %v977_v63 = vpop.f32.mrb[6].mxu1 }
 0x347   :  { %v983_v0 = vadd.f32 %v982_v52, %v3241_v36  ;;  %v1014_v1 = vrot.slane %v1010_v53, 4  ;;  %v995_v2 = vadd.f32 %v994_v54, %v3243_v39  ;;  %v1026_v3 = vrot.slane %v1012_v55, 4  ;;  %v937_v4 = vpop.f32.mrb[7].mxu0  ;;  %v978_v5 = vpop.f32.mrb[7].mxu1 }
 0x348   :  { %v989_v6 = vadd.f32 %v988_v58, %v3251_v56  ;;  %v1020_v7 = vrot.slane %v1011_v59, 4  ;;  %v1001_v8 = vadd.f32 %v1000_v60, %v3253_v57  ;;  %v1032_v9 = vrot.slane %v1013_v61, 4 }
 0x349   :  { %v984_v10 = vrot.slane %v983_v0, 2  ;;  %v1015_v11 = vadd.f32 %v1014_v1, %v1010_v53  ;;  %v996_v12 = vrot.slane %v995_v2, 2  ;;  %v1027_v13 = vadd.f32 %v1026_v3, %v1012_v55 }
 0x34a   :  { %v990_v15 = vrot.slane %v989_v6, 2  ;;  %v1021_v17 = vadd.f32 %v1020_v7, %v1011_v59  ;;  %v1002_v19 = vrot.slane %v1001_v8, 2  ;;  %v1033_v20 = vadd.f32 %v1032_v9, %v1013_v61 }
 0x34b   :  { %v985_v21 = vadd.f32 %v984_v10, %v983_v0  ;;  %v1016_v22 = vrot.slane %v1015_v11, 2  ;;  %v997_v23 = vadd.f32 %v996_v12, %v995_v2  ;;  %v1028_v24 = vrot.slane %v1027_v13, 2 }
 0x34c   :  { %v991_v25 = vadd.f32 %v990_v15, %v989_v6  ;;  %v1022_v26 = vrot.slane %v1021_v17, 2  ;;  %v1003_v27 = vadd.f32 %v1002_v19, %v1001_v8  ;;  %v1034_v28 = vrot.slane %v1033_v20, 2  ;;  %v980_v15 = vld [vmem:[%s3504_s7] sm:$0xf] }
 0x34d   :  { %v986_v29 = vrot.slane %v985_v21, 1  ;;  %v1017_v31 = vadd.f32 %v1016_v22, %v1015_v11  ;;  %v998_v32 = vrot.slane %v997_v23, 1  ;;  %v1029_v33 = vadd.f32 %v1028_v24, %v1027_v13 }
 0x34e   :  { %v992_v34 = vrot.slane %v991_v25, 1  ;;  %v1023_v35 = vadd.f32 %v1022_v26, %v1021_v17  ;;  %v1004_v37 = vrot.slane %v1003_v27, 1  ;;  %v1035_v38 = vadd.f32 %v1034_v28, %v1033_v20 }
 0x34f   :  { %v987_v40 = vadd.f32 %v986_v29, %v985_v21  ;;  %v1018_v41 = vrot.slane %v1017_v31, 1  ;;  %v999_v42 = vadd.f32 %v998_v32, %v997_v23  ;;  %v1030_v43 = vrot.slane %v1029_v33, 1 }
 0x350   :  { %v993_v44 = vadd.f32 %v992_v34, %v991_v25  ;;  %v1024_v45 = vrot.slane %v1023_v35, 1  ;;  %v1005_v46 = vadd.f32 %v1004_v37, %v1003_v27  ;;  %v1036_v47 = vrot.slane %v1035_v38, 1 }
 0x351   :  { %v1006_v48 = vmul.f32 0.125, %v987_v40  ;;  %v1019_v49 = vadd.f32 %v1018_v41, %v1017_v31  ;;  %v1008_v50 = vmul.f32 0.125, %v999_v42  ;;  %v1031_v51 = vadd.f32 %v1030_v43, %v1029_v33 }
 0x352   :  { %v1007_v52 = vmul.f32 0.125, %v993_v44  ;;  %v1025_v53 = vadd.f32 %v1024_v45, %v1023_v35  ;;  %v1009_v54 = vmul.f32 0.125, %v1005_v46  ;;  %v1037_v55 = vadd.f32 %v1036_v47, %v1035_v38  ;;  %v981_v47 = vld [vmem:[%s3505_s8] sm:$0xf] }
 0x353   :  { %v1038_v58 = vmul.f32 0.125, %v1019_v49  ;;  %v1042_v59 = vmul.f32 %v1006_v48, %v1006_v48  ;;  %v1040_v60 = vmul.f32 0.125, %v1031_v51  ;;  %v1044_v61 = vmul.f32 %v1008_v50, %v1008_v50 }
 0x354   :  { %v1039_v62 = vmul.f32 0.125, %v1025_v53  ;;  %v1043_v63 = vmul.f32 %v1007_v52, %v1007_v52  ;;  %v1041_v0 = vmul.f32 0.125, %v1037_v55  ;;  %v1045_v1 = vmul.f32 %v1009_v54, %v1009_v54 }
 0x355   :  { %v1046_v2 = vsub.f32 %v1038_v58, %v1042_v59  ;;  %v1048_v3 = vsub.f32 %v1040_v60, %v1044_v61  ;;  %v3269_v17 = vsub.s32 2, %v3202_v14  ;;  %v3272_v19 = vsub.s32 3, %v3202_v14 }
 0x356   :  { %v1047_v4 = vsub.f32 %v1039_v62, %v1043_v63  ;;  %v1049_v5 = vsub.f32 %v1041_v0, %v1045_v1  ;;  %v1066_v20 = vrot.slane %v980_v15, %v3205_v16  ;;  %v1070_v22 = vrot.slane %v980_v15, %v3211_v18 }
 0x357   :  { %v1050_v6 = vmax.f32 %v1046_v2, 0.0  ;;  %v1052_v7 = vmax.f32 %v1048_v3, 0.0  ;;  %v1074_v21 = vrot.slane %v980_v15, %v3269_v17  ;;  %v1078_v24 = vrot.slane %v980_v15, %v3272_v19 }
 0x358   :  { %v1051_v8 = vmax.f32 %v1047_v4, 0.0  ;;  %v1053_v9 = vmax.f32 %v1049_v5, 0.0 }
 0x359   :  { %v1054_v10 = vadd.f32 0.8, %v1050_v6  ;;  %v1056_v11 = vadd.f32 0.8, %v1052_v7 }
 0x35a   :  { %v1055_v12 = vadd.f32 0.8, %v1051_v8  ;;  %v1057_v13 = vadd.f32 0.8, %v1053_v9 }
 0x35b   :  { %2807 = vrsqrt.f32 %v1054_v10 }
 0x35c   :  { %2809 = vrsqrt.f32 %v1056_v11 }
 0x35d   :  { %2811 = vrsqrt.f32 %v1055_v12 }
 0x35e   :  { %2813 = vrsqrt.f32 %v1057_v13 }
 0x365   :  { %v2808_v23 = vpop.eup %2807 }
 0x366   :  { %v2810_v25 = vpop.eup %2809  ;;  %v1083_v26 = vmul.f32 %v2808_v23, %v1066_v20 }
 0x367   :  { %v2812_v27 = vpop.eup %2811  ;;  %v1085_v28 = vmul.f32 %v2810_v25, %v1074_v21 }
 0x368   :  { %v2814_v29 = vpop.eup %2813  ;;  %v1087_v31 = vmul.f32 %v1083_v26, %v1006_v48  ;;  %v1084_v32 = vmul.f32 %v2812_v27, %v1070_v22  ;;  %v1124_v44 = vrot.slane %v1083_v26, %v3205_v16 }
 0x369   :  { %v1089_v33 = vmul.f32 %v1085_v28, %v1008_v50  ;;  %v1086_v34 = vmul.f32 %v2814_v29, %v1078_v24  ;;  %v1132_v45 = vrot.slane %v1085_v28, %v3205_v16 }
 0x36a   :  { %v1088_v35 = vmul.f32 %v1084_v32, %v1007_v52  ;;  %v1128_v46 = vrot.slane %v1084_v32, %v3205_v16  ;;  %v1137_v51 = vmul.f32 %v1124_v44, %v3241_v36 }
 0x36b   :  { %v1090_v37 = vmul.f32 %v1086_v34, %v1009_v54  ;;  %v1136_v48 = vrot.slane %v1086_v34, %v3205_v16  ;;  %v1139_v52 = vmul.f32 %v1132_v45, %v3243_v39 }
 0x36c   :  { %v1095_v38 = vcombine.low %v1087_v31, %v1088_v35  ;;  %v1138_v53 = vmul.f32 %v1128_v46, %v3251_v56 }
 0x36d   :  { %v1096_v40 = vcombine.low %v1089_v33, %v1090_v37  ;;  %v1140_v54 = vmul.f32 %v1136_v48, %v3253_v57 }
 0x36e   :  { %v1103_v41 = vrot.slane %v1095_v38, %v3216_v30 }
 0x36f   :  { %v1110_v42 = vrot.slane %v1096_v40, %v3216_v30 }
 0x371   :  { %v1111_v43 = vcombine.low %v1103_v41, %v1110_v42 }
 0x373   :  { %v1118_v49 = vrot.slane %v1111_v43, %v3216_v30 }
 0x375   :  { %v1120_v50 = vsub.f32 %v981_v47, %v1118_v49 }
 0x377   :  { %v1145_v55 = vrot.slane %v1120_v50, %v3205_v16  ;;  %v1149_v58 = vrot.slane %v1120_v50, %v3211_v18  ;;  %v1153_v59 = vrot.slane %v1120_v50, %v3269_v17  ;;  %v1157_v60 = vrot.slane %v1120_v50, %v3272_v19 }
 0x379   :  { %v1162_v61 = vadd.f32 %v1145_v55, %v1137_v51  ;;  %v1163_v62 = vadd.f32 %v1149_v58, %v1138_v53  ;;  %v1164_v63 = vadd.f32 %v1153_v59, %v1139_v52  ;;  %v1165_v0 = vadd.f32 %v1157_v60, %v1140_v54 }
 0x37b   :  { %v1166_v1 = vmul.f32 0.2, %v1162_v61  ;;  %v1167_v36 = vmul.f32 0.2, %v1163_v62  ;;  %v1168_v2 = vmul.f32 0.2, %v1164_v63 }
 0x37c   :  { %v1169_v39 = vmul.f32 0.2, %v1165_v0 }
 0x37d   :  { %v1170_v3 = vmax.f32 %v1162_v61, %v1166_v1  ;;  %v1171_v56 = vmax.f32 %v1163_v62, %v1167_v36  ;;  %v1172_v4 = vmax.f32 %v1164_v63, %v1168_v2 }
 0x37e   :  { %v1173_v57 = vmax.f32 %v1165_v0, %v1169_v39 }
 0x37f   :  { %v3296_v5 = vpack.c.bf16 %v1170_v3, %v1170_v3  ;;  %v3298_v6 = vpack.c.bf16 %v1171_v56, %v1171_v56  ;;  %v3300_v7 = vpack.c.bf16 %v1172_v4, %v1172_v4 }
 0x380   :  { %v3302_v8 = vpack.c.bf16 %v1173_v57, %v1173_v57 }
 0x381   :  { %2993 = dma.done.wait [#allocation4], 32768 }
 0x382   :  { %2994 = vsyncadd [#allocation4], 4294934528  ;;  %1470 = vmatprep.mubr.bf16.mxu0 %v3298_v6  ;;  %1552 = vmatprep.mubr.bf16.mxu1 %v3298_v6  ;;  %v1183_v9 = vld [vmem:[#allocation2 + $0x8] sm:$0xff]  ;;  %v1185_v10 = vld [vmem:[#allocation2 + $0x18] sm:$0xff] }
 0x383   :  { %v1182_v11 = vld [vmem:[#allocation2] sm:$0xff]  ;;  %1438 = vmatprep.subr.bf16.mxu0 %v1183_v9  ;;  %1520 = vmatprep.subr.bf16.mxu1 %v1185_v10  ;;  %v1184_v12 = vld [vmem:[#allocation2 + $0x10] sm:$0xff]  ;;  %v1191_v13 = vld [vmem:[#allocation2 + $0x48] sm:$0xff] }
 0x384   :  { %v1193_v15 = vld [vmem:[#allocation2 + $0x58] sm:$0xff]  ;;  %1439 = vmatpush1.bf16.msra.mxu0 %v1182_v11  ;;  %1521 = vmatpush1.bf16.msra.mxu1 %v1184_v12  ;;  %v1190_v20 = vld [vmem:[#allocation2 + $0x40] sm:$0xff]  ;;  %v1192_v21 = vld [vmem:[#allocation2 + $0x50] sm:$0xff] }
 0x385   :  { %1440 = vmatprep.subr.bf16.mxu0 %v1191_v13  ;;  %1522 = vmatprep.subr.bf16.mxu1 %v1193_v15  ;;  %v1199_v22 = vld [vmem:[#allocation2 + $0x88] sm:$0xff]  ;;  %v1201_v23 = vld [vmem:[#allocation2 + $0x98] sm:$0xff]  ;;  %v1198_v24 = vld [vmem:[#allocation2 + $0x80] sm:$0xff] }
 0x386   :  { %v1200_v25 = vld [vmem:[#allocation2 + $0x90] sm:$0xff]  ;;  %v1207_v26 = vld [vmem:[#allocation2 + $0xc8] sm:$0xff]  ;;  %v1209_v27 = vld [vmem:[#allocation2 + $0xd8] sm:$0xff] }
 0x387   :  { %v1206_v28 = vld [vmem:[#allocation2 + $0xc0] sm:$0xff]  ;;  %v1208_v29 = vld [vmem:[#allocation2 + $0xd0] sm:$0xff]  ;;  %v1215_v31 = vld [vmem:[#allocation2 + $0x108] sm:$0xff] }
 0x388   :  { %1441 = vmatpush1.bf16.msra.mxu0 %v1190_v20  ;;  %1523 = vmatpush1.bf16.msra.mxu1 %v1192_v21  ;;  %v1217_v32 = vld [vmem:[#allocation2 + $0x118] sm:$0xff]  ;;  %v1214_v33 = vld [vmem:[#allocation2 + $0x100] sm:$0xff]  ;;  %v1216_v34 = vld [vmem:[#allocation2 + $0x110] sm:$0xff] }
 0x389   :  { %1442 = vmatprep.subr.bf16.mxu0 %v1199_v22  ;;  %1524 = vmatprep.subr.bf16.mxu1 %v1201_v23  ;;  %v1223_v35 = vld [vmem:[#allocation2 + $0x148] sm:$0xff]  ;;  %v1225_v37 = vld [vmem:[#allocation2 + $0x158] sm:$0xff]  ;;  %v1222_v38 = vld [vmem:[#allocation2 + $0x140] sm:$0xff] }
 0x38a   :  { %v1224_v40 = vld [vmem:[#allocation2 + $0x150] sm:$0xff]  ;;  %v1231_v41 = vld [vmem:[#allocation2 + $0x188] sm:$0xff]  ;;  %v1233_v42 = vld [vmem:[#allocation2 + $0x198] sm:$0xff] }
 0x38b   :  { %v1230_v43 = vld [vmem:[#allocation2 + $0x180] sm:$0xff]  ;;  %v1232_v44 = vld [vmem:[#allocation2 + $0x190] sm:$0xff]  ;;  %v1239_v45 = vld [vmem:[#allocation2 + $0x1c8] sm:$0xff] }
 0x38c   :  { %1443 = vmatpush1.bf16.msra.mxu0 %v1198_v24  ;;  %1525 = vmatpush1.bf16.msra.mxu1 %v1200_v25  ;;  %v1241_v46 = vld [vmem:[#allocation2 + $0x1d8] sm:$0xff]  ;;  %v1238_v47 = vld [vmem:[#allocation2 + $0x1c0] sm:$0xff]  ;;  %v1240_v48 = vld [vmem:[#allocation2 + $0x1d0] sm:$0xff] }
 0x38d   :  { %1444 = vmatprep.subr.bf16.mxu0 %v1207_v26  ;;  %1526 = vmatprep.subr.bf16.mxu1 %v1209_v27  ;;  %v1247_v49 = vld [vmem:[#allocation2 + $0x208] sm:$0xff]  ;;  %v1249_v50 = vld [vmem:[#allocation2 + $0x218] sm:$0xff]  ;;  %v1246_v51 = vld [vmem:[#allocation2 + $0x200] sm:$0xff] }
 0x38e   :  { %v1248_v52 = vld [vmem:[#allocation2 + $0x210] sm:$0xff]  ;;  %v1255_v53 = vld [vmem:[#allocation2 + $0x248] sm:$0xff]  ;;  %v1257_v54 = vld [vmem:[#allocation2 + $0x258] sm:$0xff] }
 0x38f   :  { %v1254_v55 = vld [vmem:[#allocation2 + $0x240] sm:$0xff]  ;;  %v1256_v58 = vld [vmem:[#allocation2 + $0x250] sm:$0xff]  ;;  %v1263_v59 = vld [vmem:[#allocation2 + $0x288] sm:$0xff] }
 0x390   :  { %1445 = vmatpush1.bf16.msra.mxu0 %v1206_v28  ;;  %1527 = vmatpush1.bf16.msra.mxu1 %v1208_v29  ;;  %v1265_v60 = vld [vmem:[#allocation2 + $0x298] sm:$0xff]  ;;  %v1262_v61 = vld [vmem:[#allocation2 + $0x280] sm:$0xff]  ;;  %v1264_v62 = vld [vmem:[#allocation2 + $0x290] sm:$0xff] }
 0x391   :  { %1446 = vmatprep.subr.bf16.mxu0 %v1215_v31  ;;  %1528 = vmatprep.subr.bf16.mxu1 %v1217_v32  ;;  %v1271_v63 = vld [vmem:[#allocation2 + $0x2c8] sm:$0xff]  ;;  %v1273_v0 = vld [vmem:[#allocation2 + $0x2d8] sm:$0xff]  ;;  %v1270_v1 = vld [vmem:[#allocation2 + $0x2c0] sm:$0xff] }
 0x392   :  { %v1272_v36 = vld [vmem:[#allocation2 + $0x2d0] sm:$0xff]  ;;  %v1279_v2 = vld [vmem:[#allocation2 + $0x308] sm:$0xff]  ;;  %v1281_v39 = vld [vmem:[#allocation2 + $0x318] sm:$0xff] }
 0x393   :  { %v1278_v3 = vld [vmem:[#allocation2 + $0x300] sm:$0xff]  ;;  %v1280_v56 = vld [vmem:[#allocation2 + $0x310] sm:$0xff]  ;;  %v1287_v4 = vld [vmem:[#allocation2 + $0x348] sm:$0xff] }
 0x394   :  { %1447 = vmatpush1.bf16.msra.mxu0 %v1214_v33  ;;  %1529 = vmatpush1.bf16.msra.mxu1 %v1216_v34  ;;  %v1289_v57 = vld [vmem:[#allocation2 + $0x358] sm:$0xff]  ;;  %v1286_v9 = vld [vmem:[#allocation2 + $0x340] sm:$0xff]  ;;  %v1288_v10 = vld [vmem:[#allocation2 + $0x350] sm:$0xff] }
 0x395   :  { %1448 = vmatprep.subr.bf16.mxu0 %v1223_v35  ;;  %1530 = vmatprep.subr.bf16.mxu1 %v1225_v37  ;;  %v1295_v11 = vld [vmem:[#allocation2 + $0x388] sm:$0xff]  ;;  %v1297_v12 = vld [vmem:[#allocation2 + $0x398] sm:$0xff]  ;;  %v1294_v13 = vld [vmem:[#allocation2 + $0x380] sm:$0xff] }
 0x396   :  { %v1296_v15 = vld [vmem:[#allocation2 + $0x390] sm:$0xff]  ;;  %v1303_v20 = vld [vmem:[#allocation2 + $0x3c8] sm:$0xff]  ;;  %v1305_v21 = vld [vmem:[#allocation2 + $0x3d8] sm:$0xff] }
 0x397   :  { %v1302_v22 = vld [vmem:[#allocation2 + $0x3c0] sm:$0xff]  ;;  %v1304_v23 = vld [vmem:[#allocation2 + $0x3d0] sm:$0xff]  ;;  %v1311_v24 = vld [vmem:[#allocation2 + $0x408] sm:$0xff] }
 0x398   :  { %1449 = vmatpush1.bf16.msra.mxu0 %v1222_v38  ;;  %1531 = vmatpush1.bf16.msra.mxu1 %v1224_v40  ;;  %v1313_v25 = vld [vmem:[#allocation2 + $0x418] sm:$0xff]  ;;  %v1310_v26 = vld [vmem:[#allocation2 + $0x400] sm:$0xff]  ;;  %v1312_v27 = vld [vmem:[#allocation2 + $0x410] sm:$0xff] }
 0x399   :  { %1450 = vmatprep.subr.bf16.mxu0 %v1231_v41  ;;  %1532 = vmatprep.subr.bf16.mxu1 %v1233_v42  ;;  %v1319_v28 = vld [vmem:[#allocation2 + $0x448] sm:$0xff]  ;;  %v1321_v29 = vld [vmem:[#allocation2 + $0x458] sm:$0xff]  ;;  %v1318_v31 = vld [vmem:[#allocation2 + $0x440] sm:$0xff] }
 0x39a   :  { %v1320_v32 = vld [vmem:[#allocation2 + $0x450] sm:$0xff]  ;;  %v1327_v33 = vld [vmem:[#allocation2 + $0x488] sm:$0xff]  ;;  %v1329_v34 = vld [vmem:[#allocation2 + $0x498] sm:$0xff] }
 0x39b   :  { %v1326_v35 = vld [vmem:[#allocation2 + $0x480] sm:$0xff]  ;;  %v1328_v37 = vld [vmem:[#allocation2 + $0x490] sm:$0xff]  ;;  %v1335_v38 = vld [vmem:[#allocation2 + $0x4c8] sm:$0xff] }
 0x39c   :  { %1451 = vmatpush1.bf16.msra.mxu0 %v1230_v43  ;;  %1533 = vmatpush1.bf16.msra.mxu1 %v1232_v44  ;;  %v1337_v40 = vld [vmem:[#allocation2 + $0x4d8] sm:$0xff]  ;;  %v1334_v41 = vld [vmem:[#allocation2 + $0x4c0] sm:$0xff]  ;;  %v1336_v42 = vld [vmem:[#allocation2 + $0x4d0] sm:$0xff] }
 0x39d   :  { %1452 = vmatprep.subr.bf16.mxu0 %v1239_v45  ;;  %1534 = vmatprep.subr.bf16.mxu1 %v1241_v46  ;;  %v1343_v43 = vld [vmem:[#allocation2 + $0x508] sm:$0xff]  ;;  %v1345_v44 = vld [vmem:[#allocation2 + $0x518] sm:$0xff]  ;;  %v1342_v45 = vld [vmem:[#allocation2 + $0x500] sm:$0xff] }
 0x39e   :  { %v1344_v46 = vld [vmem:[#allocation2 + $0x510] sm:$0xff] }
 0x3a0   :  { %1453 = vmatpush1.bf16.msra.mxu0 %v1238_v47  ;;  %1535 = vmatpush1.bf16.msra.mxu1 %v1240_v48  ;;  %v1351_v47 = vld [vmem:[#allocation2 + $0x548] sm:$0xff]  ;;  %v1353_v48 = vld [vmem:[#allocation2 + $0x558] sm:$0xff] }
 0x3a1   :  { %1454 = vmatprep.subr.bf16.mxu0 %v1247_v49  ;;  %1536 = vmatprep.subr.bf16.mxu1 %v1249_v50  ;;  %v1350_v49 = vld [vmem:[#allocation2 + $0x540] sm:$0xff]  ;;  %v1352_v50 = vld [vmem:[#allocation2 + $0x550] sm:$0xff] }
 0x3a4   :  { %1455 = vmatpush1.bf16.msra.mxu0 %v1246_v51  ;;  %1537 = vmatpush1.bf16.msra.mxu1 %v1248_v52  ;;  %v1359_v51 = vld [vmem:[#allocation2 + $0x588] sm:$0xff]  ;;  %v1361_v52 = vld [vmem:[#allocation2 + $0x598] sm:$0xff] }
 0x3a5   :  { %1456 = vmatprep.subr.bf16.mxu0 %v1255_v53  ;;  %1538 = vmatprep.subr.bf16.mxu1 %v1257_v54  ;;  %v1358_v53 = vld [vmem:[#allocation2 + $0x580] sm:$0xff]  ;;  %v1360_v54 = vld [vmem:[#allocation2 + $0x590] sm:$0xff] }
 0x3a8   :  { %1457 = vmatpush1.bf16.msra.mxu0 %v1254_v55  ;;  %1539 = vmatpush1.bf16.msra.mxu1 %v1256_v58  ;;  %v1367_v55 = vld [vmem:[#allocation2 + $0x5c8] sm:$0xff]  ;;  %v1369_v58 = vld [vmem:[#allocation2 + $0x5d8] sm:$0xff] }
 0x3a9   :  { %1458 = vmatprep.subr.bf16.mxu0 %v1263_v59  ;;  %1540 = vmatprep.subr.bf16.mxu1 %v1265_v60  ;;  %v1366_v59 = vld [vmem:[#allocation2 + $0x5c0] sm:$0xff]  ;;  %v1368_v60 = vld [vmem:[#allocation2 + $0x5d0] sm:$0xff] }
 0x3ac   :  { %1459 = vmatpush1.bf16.msra.mxu0 %v1262_v61  ;;  %1541 = vmatpush1.bf16.msra.mxu1 %v1264_v62  ;;  %v1375_v61 = vld [vmem:[#allocation2 + $0x608] sm:$0xff]  ;;  %v1377_v62 = vld [vmem:[#allocation2 + $0x618] sm:$0xff] }
 0x3ad   :  { %1460 = vmatprep.subr.bf16.mxu0 %v1271_v63  ;;  %1542 = vmatprep.subr.bf16.mxu1 %v1273_v0  ;;  %v1374_v63 = vld [vmem:[#allocation2 + $0x600] sm:$0xff]  ;;  %v1376_v0 = vld [vmem:[#allocation2 + $0x610] sm:$0xff] }
 0x3b0   :  { %1461 = vmatpush1.bf16.msra.mxu0 %v1270_v1  ;;  %1543 = vmatpush1.bf16.msra.mxu1 %v1272_v36  ;;  %v1383_v1 = vld [vmem:[#allocation2 + $0x648] sm:$0xff]  ;;  %v1385_v36 = vld [vmem:[#allocation2 + $0x658] sm:$0xff] }
 0x3b1   :  { %1462 = vmatprep.subr.bf16.mxu0 %v1279_v2  ;;  %1544 = vmatprep.subr.bf16.mxu1 %v1281_v39  ;;  %v1382_v2 = vld [vmem:[#allocation2 + $0x640] sm:$0xff]  ;;  %v1384_v39 = vld [vmem:[#allocation2 + $0x650] sm:$0xff] }
 0x3b4   :  { %1463 = vmatpush1.bf16.msra.mxu0 %v1278_v3  ;;  %1545 = vmatpush1.bf16.msra.mxu1 %v1280_v56  ;;  %v1391_v3 = vld [vmem:[#allocation2 + $0x688] sm:$0xff]  ;;  %v1393_v56 = vld [vmem:[#allocation2 + $0x698] sm:$0xff] }
 0x3b5   :  { %1464 = vmatprep.subr.bf16.mxu0 %v1287_v4  ;;  %1546 = vmatprep.subr.bf16.mxu1 %v1289_v57  ;;  %v1390_v4 = vld [vmem:[#allocation2 + $0x680] sm:$0xff]  ;;  %v1392_v57 = vld [vmem:[#allocation2 + $0x690] sm:$0xff] }
 0x3b8   :  { %1465 = vmatpush1.bf16.msra.mxu0 %v1286_v9  ;;  %1547 = vmatpush1.bf16.msra.mxu1 %v1288_v10  ;;  %v1399_v9 = vld [vmem:[#allocation2 + $0x6c8] sm:$0xff]  ;;  %v1401_v10 = vld [vmem:[#allocation2 + $0x6d8] sm:$0xff] }
 0x3b9   :  { %1466 = vmatprep.subr.bf16.mxu0 %v1295_v11  ;;  %1548 = vmatprep.subr.bf16.mxu1 %v1297_v12  ;;  %v1398_v11 = vld [vmem:[#allocation2 + $0x6c0] sm:$0xff]  ;;  %v1400_v12 = vld [vmem:[#allocation2 + $0x6d0] sm:$0xff] }
 0x3bc   :  { %1467 = vmatpush1.bf16.msra.mxu0 %v1294_v13  ;;  %1549 = vmatpush1.bf16.msra.mxu1 %v1296_v15  ;;  %v1407_v13 = vld [vmem:[#allocation2 + $0x708] sm:$0xff]  ;;  %v1409_v15 = vld [vmem:[#allocation2 + $0x718] sm:$0xff] }
 0x3bd   :  { %1468 = vmatprep.subr.bf16.mxu0 %v1303_v20  ;;  %1550 = vmatprep.subr.bf16.mxu1 %v1305_v21  ;;  %v1406_v20 = vld [vmem:[#allocation2 + $0x700] sm:$0xff]  ;;  %v1408_v21 = vld [vmem:[#allocation2 + $0x710] sm:$0xff] }
 0x3c0   :  { %1469 = vmatpush1.bf16.msra.mxu0 %v1302_v22  ;;  %1551 = vmatpush1.bf16.msra.mxu1 %v1304_v23  ;;  %v1415_v22 = vld [vmem:[#allocation2 + $0x748] sm:$0xff]  ;;  %v1417_v23 = vld [vmem:[#allocation2 + $0x758] sm:$0xff] }
 0x3c1   :  { %1479 = vmatprep.subr.bf16.mxu0 %v1311_v24  ;;  %1561 = vmatprep.subr.bf16.mxu1 %v1313_v25  ;;  %v1414_v24 = vld [vmem:[#allocation2 + $0x740] sm:$0xff]  ;;  %v1416_v25 = vld [vmem:[#allocation2 + $0x750] sm:$0xff] }
 0x3c3   :  { %1471 = vmatmul.mubr.bf16.vlgmr.msra.gmra.mrb[8].mxu0 %v3296_v5  ;;  %1553 = vmatmul.mubr.bf16.vlgmr.msra.gmra.mrb[8].mxu1 %v3296_v5 }
 0x3c4   :  { %1480 = vmatpush1.bf16.msra.mxu0 %v1310_v26  ;;  %1562 = vmatpush1.bf16.msra.mxu1 %v1312_v27  ;;  %v1423_v26 = vld [vmem:[#allocation2 + $0x788] sm:$0xff]  ;;  %v1425_v27 = vld [vmem:[#allocation2 + $0x798] sm:$0xff] }
 0x3c5   :  { %1481 = vmatprep.subr.bf16.mxu0 %v1319_v28  ;;  %1563 = vmatprep.subr.bf16.mxu1 %v1321_v29  ;;  %v1422_v28 = vld [vmem:[#allocation2 + $0x780] sm:$0xff]  ;;  %v1424_v29 = vld [vmem:[#allocation2 + $0x790] sm:$0xff] }
 0x3c6   :  { %1511 = vmatprep.mubr.bf16.mxu0 %v3302_v8  ;;  %1593 = vmatprep.mubr.bf16.mxu1 %v3302_v8 }
 0x3c8   :  { %1482 = vmatpush1.bf16.msra.mxu0 %v1318_v31  ;;  %1564 = vmatpush1.bf16.msra.mxu1 %v1320_v32  ;;  %v1431_v31 = vld [vmem:[#allocation2 + $0x7c8] sm:$0xff]  ;;  %v1433_v32 = vld [vmem:[#allocation2 + $0x7d8] sm:$0xff] }
 0x3c9   :  { %1483 = vmatprep.subr.bf16.mxu0 %v1327_v33  ;;  %1565 = vmatprep.subr.bf16.mxu1 %v1329_v34  ;;  %v1430_v33 = vld [vmem:[#allocation2 + $0x7c0] sm:$0xff]  ;;  %v1432_v34 = vld [vmem:[#allocation2 + $0x7d0] sm:$0xff] }
 0x3cc   :  { %1484 = vmatpush1.bf16.msra.mxu0 %v1326_v35  ;;  %1566 = vmatpush1.bf16.msra.mxu1 %v1328_v37  ;;  %v1187_v35 = vld [vmem:[#allocation2 + $0x28] sm:$0xff]  ;;  %v1189_v37 = vld [vmem:[#allocation2 + $0x38] sm:$0xff] }
 0x3cd   :  { %1485 = vmatprep.subr.bf16.mxu0 %v1335_v38  ;;  %1567 = vmatprep.subr.bf16.mxu1 %v1337_v40  ;;  %v1186_v38 = vld [vmem:[#allocation2 + $0x20] sm:$0xff]  ;;  %v1188_v40 = vld [vmem:[#allocation2 + $0x30] sm:$0xff] }
 0x3d0   :  { %1486 = vmatpush1.bf16.msra.mxu0 %v1334_v41  ;;  %1568 = vmatpush1.bf16.msra.mxu1 %v1336_v42  ;;  %v1195_v41 = vld [vmem:[#allocation2 + $0x68] sm:$0xff]  ;;  %v1197_v42 = vld [vmem:[#allocation2 + $0x78] sm:$0xff] }
 0x3d1   :  { %1487 = vmatprep.subr.bf16.mxu0 %v1343_v43  ;;  %1569 = vmatprep.subr.bf16.mxu1 %v1345_v44  ;;  %v1194_v43 = vld [vmem:[#allocation2 + $0x60] sm:$0xff]  ;;  %v1196_v44 = vld [vmem:[#allocation2 + $0x70] sm:$0xff] }
 0x3d4   :  { %1488 = vmatpush1.bf16.msra.mxu0 %v1342_v45  ;;  %1570 = vmatpush1.bf16.msra.mxu1 %v1344_v46  ;;  %v1203_v45 = vld [vmem:[#allocation2 + $0xa8] sm:$0xff]  ;;  %v1205_v46 = vld [vmem:[#allocation2 + $0xb8] sm:$0xff] }
 0x3d5   :  { %1489 = vmatprep.subr.bf16.mxu0 %v1351_v47  ;;  %1571 = vmatprep.subr.bf16.mxu1 %v1353_v48  ;;  %v1202_v47 = vld [vmem:[#allocation2 + $0xa0] sm:$0xff]  ;;  %v1204_v48 = vld [vmem:[#allocation2 + $0xb0] sm:$0xff] }
 0x3d8   :  { %1490 = vmatpush1.bf16.msra.mxu0 %v1350_v49  ;;  %1572 = vmatpush1.bf16.msra.mxu1 %v1352_v50  ;;  %v1211_v49 = vld [vmem:[#allocation2 + $0xe8] sm:$0xff]  ;;  %v1213_v50 = vld [vmem:[#allocation2 + $0xf8] sm:$0xff] }
 0x3d9   :  { %1491 = vmatprep.subr.bf16.mxu0 %v1359_v51  ;;  %1573 = vmatprep.subr.bf16.mxu1 %v1361_v52  ;;  %v1210_v51 = vld [vmem:[#allocation2 + $0xe0] sm:$0xff]  ;;  %v1212_v52 = vld [vmem:[#allocation2 + $0xf0] sm:$0xff] }
 0x3dc   :  { %1492 = vmatpush1.bf16.msra.mxu0 %v1358_v53  ;;  %1574 = vmatpush1.bf16.msra.mxu1 %v1360_v54  ;;  %v1219_v53 = vld [vmem:[#allocation2 + $0x128] sm:$0xff]  ;;  %v1221_v54 = vld [vmem:[#allocation2 + $0x138] sm:$0xff] }
 0x3dd   :  { %1493 = vmatprep.subr.bf16.mxu0 %v1367_v55  ;;  %1575 = vmatprep.subr.bf16.mxu1 %v1369_v58  ;;  %v1220_v55 = vld [vmem:[#allocation2 + $0x130] sm:$0xff]  ;;  %v1227_v58 = vld [vmem:[#allocation2 + $0x168] sm:$0xff] }
 0x3e0   :  { %1494 = vmatpush1.bf16.msra.mxu0 %v1366_v59  ;;  %1576 = vmatpush1.bf16.msra.mxu1 %v1368_v60  ;;  %v1229_v59 = vld [vmem:[#allocation2 + $0x178] sm:$0xff]  ;;  %v1226_v60 = vld [vmem:[#allocation2 + $0x160] sm:$0xff] }
 0x3e1   :  { %1495 = vmatprep.subr.bf16.mxu0 %v1375_v61  ;;  %1577 = vmatprep.subr.bf16.mxu1 %v1377_v62  ;;  %v1228_v61 = vld [vmem:[#allocation2 + $0x170] sm:$0xff]  ;;  %v1235_v62 = vld [vmem:[#allocation2 + $0x1a8] sm:$0xff] }
 0x3e4   :  { %1496 = vmatpush1.bf16.msra.mxu0 %v1374_v63  ;;  %1578 = vmatpush1.bf16.msra.mxu1 %v1376_v0  ;;  %v1237_v63 = vld [vmem:[#allocation2 + $0x1b8] sm:$0xff]  ;;  %v1234_v0 = vld [vmem:[#allocation2 + $0x1a0] sm:$0xff] }
 0x3e5   :  { %1497 = vmatprep.subr.bf16.mxu0 %v1383_v1  ;;  %1579 = vmatprep.subr.bf16.mxu1 %v1385_v36  ;;  %v1236_v1 = vld [vmem:[#allocation2 + $0x1b0] sm:$0xff]  ;;  %v1243_v36 = vld [vmem:[#allocation2 + $0x1e8] sm:$0xff] }
 0x3e8   :  { %1498 = vmatpush1.bf16.msra.mxu0 %v1382_v2  ;;  %1580 = vmatpush1.bf16.msra.mxu1 %v1384_v39  ;;  %v1245_v2 = vld [vmem:[#allocation2 + $0x1f8] sm:$0xff]  ;;  %v1242_v39 = vld [vmem:[#allocation2 + $0x1e0] sm:$0xff] }
 0x3e9   :  { %1499 = vmatprep.subr.bf16.mxu0 %v1391_v3  ;;  %1581 = vmatprep.subr.bf16.mxu1 %v1393_v56  ;;  %v1244_v3 = vld [vmem:[#allocation2 + $0x1f0] sm:$0xff]  ;;  %v1251_v56 = vld [vmem:[#allocation2 + $0x228] sm:$0xff] }
 0x3ec   :  { %1500 = vmatpush1.bf16.msra.mxu0 %v1390_v4  ;;  %1582 = vmatpush1.bf16.msra.mxu1 %v1392_v57  ;;  %v1253_v4 = vld [vmem:[#allocation2 + $0x238] sm:$0xff]  ;;  %v1250_v57 = vld [vmem:[#allocation2 + $0x220] sm:$0xff] }
 0x3ed   :  { %1501 = vmatprep.subr.bf16.mxu0 %v1399_v9  ;;  %1583 = vmatprep.subr.bf16.mxu1 %v1401_v10  ;;  %v1252_v9 = vld [vmem:[#allocation2 + $0x230] sm:$0xff]  ;;  %v1259_v10 = vld [vmem:[#allocation2 + $0x268] sm:$0xff] }
 0x3f0   :  { %1502 = vmatpush1.bf16.msra.mxu0 %v1398_v11  ;;  %1584 = vmatpush1.bf16.msra.mxu1 %v1400_v12  ;;  %v1261_v11 = vld [vmem:[#allocation2 + $0x278] sm:$0xff]  ;;  %v1258_v12 = vld [vmem:[#allocation2 + $0x260] sm:$0xff] }
 0x3f1   :  { %1503 = vmatprep.subr.bf16.mxu0 %v1407_v13  ;;  %1585 = vmatprep.subr.bf16.mxu1 %v1409_v15  ;;  %v1260_v13 = vld [vmem:[#allocation2 + $0x270] sm:$0xff]  ;;  %v1267_v15 = vld [vmem:[#allocation2 + $0x2a8] sm:$0xff] }
 0x3f4   :  { %1504 = vmatpush1.bf16.msra.mxu0 %v1406_v20  ;;  %1586 = vmatpush1.bf16.msra.mxu1 %v1408_v21  ;;  %v1269_v20 = vld [vmem:[#allocation2 + $0x2b8] sm:$0xff]  ;;  %v1266_v21 = vld [vmem:[#allocation2 + $0x2a0] sm:$0xff] }
 0x3f5   :  { %1505 = vmatprep.subr.bf16.mxu0 %v1415_v22  ;;  %1587 = vmatprep.subr.bf16.mxu1 %v1417_v23  ;;  %v1268_v22 = vld [vmem:[#allocation2 + $0x2b0] sm:$0xff]  ;;  %v1275_v23 = vld [vmem:[#allocation2 + $0x2e8] sm:$0xff] }
 0x3f8   :  { %1506 = vmatpush1.bf16.msra.mxu0 %v1414_v24  ;;  %1588 = vmatpush1.bf16.msra.mxu1 %v1416_v25  ;;  %v1277_v24 = vld [vmem:[#allocation2 + $0x2f8] sm:$0xff]  ;;  %v1274_v25 = vld [vmem:[#allocation2 + $0x2e0] sm:$0xff] }
 0x3f9   :  { %1507 = vmatprep.subr.bf16.mxu0 %v1423_v26  ;;  %1589 = vmatprep.subr.bf16.mxu1 %v1425_v27  ;;  %v1276_v26 = vld [vmem:[#allocation2 + $0x2f0] sm:$0xff]  ;;  %v1283_v27 = vld [vmem:[#allocation2 + $0x328] sm:$0xff] }
 0x3fc   :  { %1508 = vmatpush1.bf16.msra.mxu0 %v1422_v28  ;;  %1590 = vmatpush1.bf16.msra.mxu1 %v1424_v29  ;;  %v1285_v28 = vld [vmem:[#allocation2 + $0x338] sm:$0xff]  ;;  %v1282_v29 = vld [vmem:[#allocation2 + $0x320] sm:$0xff] }
 0x3fd   :  { %1509 = vmatprep.subr.bf16.mxu0 %v1431_v31  ;;  %1591 = vmatprep.subr.bf16.mxu1 %v1433_v32  ;;  %v1284_v31 = vld [vmem:[#allocation2 + $0x330] sm:$0xff]  ;;  %v1291_v32 = vld [vmem:[#allocation2 + $0x368] sm:$0xff] }
 0x400   :  { %1510 = vmatpush1.bf16.msra.mxu0 %v1430_v33  ;;  %1592 = vmatpush1.bf16.msra.mxu1 %v1432_v34  ;;  %v1293_v33 = vld [vmem:[#allocation2 + $0x378] sm:$0xff]  ;;  %v1290_v34 = vld [vmem:[#allocation2 + $0x360] sm:$0xff] }
 0x401   :  { %1602 = vmatprep.subr.bf16.mxu0 %v1187_v35  ;;  %1684 = vmatprep.subr.bf16.mxu1 %v1189_v37  ;;  %v1292_v35 = vld [vmem:[#allocation2 + $0x370] sm:$0xff]  ;;  %v1299_v37 = vld [vmem:[#allocation2 + $0x3a8] sm:$0xff] }
 0x403   :  { %1512 = vmatmul.mubr.bf16.vlgmr.msra.gmra.mrb[8].mxu0 %v3300_v7  ;;  %1594 = vmatmul.mubr.bf16.vlgmr.msra.gmra.mrb[8].mxu1 %v3300_v7 }
 0x404   :  { %1603 = vmatpush1.bf16.msra.mxu0 %v1186_v38  ;;  %1685 = vmatpush1.bf16.msra.mxu1 %v1188_v40  ;;  %v1301_v38 = vld [vmem:[#allocation2 + $0x3b8] sm:$0xff]  ;;  %v1298_v40 = vld [vmem:[#allocation2 + $0x3a0] sm:$0xff] }
 0x405   :  { %1604 = vmatprep.subr.bf16.mxu0 %v1195_v41  ;;  %1686 = vmatprep.subr.bf16.mxu1 %v1197_v42  ;;  %v1300_v41 = vld [vmem:[#allocation2 + $0x3b0] sm:$0xff]  ;;  %v1307_v42 = vld [vmem:[#allocation2 + $0x3e8] sm:$0xff] }
 0x406   :  { %1634 = vmatprep.mubr.bf16.mxu0 %v3298_v6  ;;  %1716 = vmatprep.mubr.bf16.mxu1 %v3298_v6  ;;  %v1218_v6 = vld [vmem:[#allocation2 + $0x120] sm:$0xff] }
 0x408   :  { %1605 = vmatpush1.bf16.msra.mxu0 %v1194_v43  ;;  %1687 = vmatpush1.bf16.msra.mxu1 %v1196_v44  ;;  %v1309_v43 = vld [vmem:[#allocation2 + $0x3f8] sm:$0xff]  ;;  %v1306_v44 = vld [vmem:[#allocation2 + $0x3e0] sm:$0xff] }
 0x409   :  { %1606 = vmatprep.subr.bf16.mxu0 %v1203_v45  ;;  %1688 = vmatprep.subr.bf16.mxu1 %v1205_v46  ;;  %v1308_v45 = vld [vmem:[#allocation2 + $0x3f0] sm:$0xff]  ;;  %v1315_v46 = vld [vmem:[#allocation2 + $0x428] sm:$0xff] }
 0x40c   :  { %1607 = vmatpush1.bf16.msra.mxu0 %v1202_v47  ;;  %1689 = vmatpush1.bf16.msra.mxu1 %v1204_v48  ;;  %v1317_v47 = vld [vmem:[#allocation2 + $0x438] sm:$0xff]  ;;  %v1314_v48 = vld [vmem:[#allocation2 + $0x420] sm:$0xff] }
 0x40d   :  { %1608 = vmatprep.subr.bf16.mxu0 %v1211_v49  ;;  %1690 = vmatprep.subr.bf16.mxu1 %v1213_v50  ;;  %v1316_v49 = vld [vmem:[#allocation2 + $0x430] sm:$0xff]  ;;  %v1323_v50 = vld [vmem:[#allocation2 + $0x468] sm:$0xff] }
 0x410   :  { %1609 = vmatpush1.bf16.msra.mxu0 %v1210_v51  ;;  %1691 = vmatpush1.bf16.msra.mxu1 %v1212_v52  ;;  %v1325_v51 = vld [vmem:[#allocation2 + $0x478] sm:$0xff]  ;;  %v1322_v52 = vld [vmem:[#allocation2 + $0x460] sm:$0xff] }
 0x411   :  { %1610 = vmatprep.subr.bf16.mxu0 %v1219_v53  ;;  %1692 = vmatprep.subr.bf16.mxu1 %v1221_v54  ;;  %v1324_v53 = vld [vmem:[#allocation2 + $0x470] sm:$0xff]  ;;  %v1331_v54 = vld [vmem:[#allocation2 + $0x4a8] sm:$0xff] }
 0x414   :  { %1611 = vmatpush1.bf16.msra.mxu0 %v1218_v6  ;;  %1693 = vmatpush1.bf16.msra.mxu1 %v1220_v55  ;;  %v1333_v6 = vld [vmem:[#allocation2 + $0x4b8] sm:$0xff]  ;;  %v1330_v55 = vld [vmem:[#allocation2 + $0x4a0] sm:$0xff] }
 0x415   :  { %1612 = vmatprep.subr.bf16.mxu0 %v1227_v58  ;;  %1694 = vmatprep.subr.bf16.mxu1 %v1229_v59  ;;  %v1332_v58 = vld [vmem:[#allocation2 + $0x4b0] sm:$0xff]  ;;  %v1339_v59 = vld [vmem:[#allocation2 + $0x4e8] sm:$0xff] }
 0x418   :  { %1613 = vmatpush1.bf16.msra.mxu0 %v1226_v60  ;;  %1695 = vmatpush1.bf16.msra.mxu1 %v1228_v61  ;;  %v1338_v60 = vld [vmem:[#allocation2 + $0x4e0] sm:$0xff]  ;;  %v1340_v61 = vld [vmem:[#allocation2 + $0x4f0] sm:$0xff] }
 0x419   :  { %1614 = vmatprep.subr.bf16.mxu0 %v1235_v62  ;;  %1696 = vmatprep.subr.bf16.mxu1 %v1237_v63  ;;  %v1347_v62 = vld [vmem:[#allocation2 + $0x528] sm:$0xff]  ;;  %v1349_v63 = vld [vmem:[#allocation2 + $0x538] sm:$0xff] }
 0x41c   :  { %1615 = vmatpush1.bf16.msra.mxu0 %v1234_v0  ;;  %1697 = vmatpush1.bf16.msra.mxu1 %v1236_v1  ;;  %v1348_v0 = vld [vmem:[#allocation2 + $0x530] sm:$0xff]  ;;  %v1355_v1 = vld [vmem:[#allocation2 + $0x568] sm:$0xff] }
 0x41d   :  { %1616 = vmatprep.subr.bf16.mxu0 %v1243_v36  ;;  %1698 = vmatprep.subr.bf16.mxu1 %v1245_v2  ;;  %v1357_v36 = vld [vmem:[#allocation2 + $0x578] sm:$0xff]  ;;  %v1354_v2 = vld [vmem:[#allocation2 + $0x560] sm:$0xff] }
 0x420   :  { %1617 = vmatpush1.bf16.msra.mxu0 %v1242_v39  ;;  %1699 = vmatpush1.bf16.msra.mxu1 %v1244_v3  ;;  %v1356_v39 = vld [vmem:[#allocation2 + $0x570] sm:$0xff]  ;;  %v1363_v3 = vld [vmem:[#allocation2 + $0x5a8] sm:$0xff] }
 0x421   :  { %1618 = vmatprep.subr.bf16.mxu0 %v1251_v56  ;;  %1700 = vmatprep.subr.bf16.mxu1 %v1253_v4  ;;  %v1365_v56 = vld [vmem:[#allocation2 + $0x5b8] sm:$0xff]  ;;  %v1362_v4 = vld [vmem:[#allocation2 + $0x5a0] sm:$0xff] }
 0x424   :  { %1619 = vmatpush1.bf16.msra.mxu0 %v1250_v57  ;;  %1701 = vmatpush1.bf16.msra.mxu1 %v1252_v9  ;;  %v1364_v57 = vld [vmem:[#allocation2 + $0x5b0] sm:$0xff]  ;;  %v1371_v9 = vld [vmem:[#allocation2 + $0x5e8] sm:$0xff] }
 0x425   :  { %1620 = vmatprep.subr.bf16.mxu0 %v1259_v10  ;;  %1702 = vmatprep.subr.bf16.mxu1 %v1261_v11  ;;  %v1373_v10 = vld [vmem:[#allocation2 + $0x5f8] sm:$0xff]  ;;  %v1370_v11 = vld [vmem:[#allocation2 + $0x5e0] sm:$0xff] }
 0x428   :  { %1621 = vmatpush1.bf16.msra.mxu0 %v1258_v12  ;;  %1703 = vmatpush1.bf16.msra.mxu1 %v1260_v13  ;;  %v1372_v12 = vld [vmem:[#allocation2 + $0x5f0] sm:$0xff]  ;;  %v1379_v13 = vld [vmem:[#allocation2 + $0x628] sm:$0xff] }
 0x429   :  { %1622 = vmatprep.subr.bf16.mxu0 %v1267_v15  ;;  %1704 = vmatprep.subr.bf16.mxu1 %v1269_v20  ;;  %v1381_v15 = vld [vmem:[#allocation2 + $0x638] sm:$0xff]  ;;  %v1378_v20 = vld [vmem:[#allocation2 + $0x620] sm:$0xff] }
 0x42c   :  { %1623 = vmatpush1.bf16.msra.mxu0 %v1266_v21  ;;  %1705 = vmatpush1.bf16.msra.mxu1 %v1268_v22  ;;  %v1380_v21 = vld [vmem:[#allocation2 + $0x630] sm:$0xff]  ;;  %v1387_v22 = vld [vmem:[#allocation2 + $0x668] sm:$0xff] }
 0x42d   :  { %1624 = vmatprep.subr.bf16.mxu0 %v1275_v23  ;;  %1706 = vmatprep.subr.bf16.mxu1 %v1277_v24  ;;  %v1389_v23 = vld [vmem:[#allocation2 + $0x678] sm:$0xff]  ;;  %v1386_v24 = vld [vmem:[#allocation2 + $0x660] sm:$0xff] }
 0x430   :  { %1625 = vmatpush1.bf16.msra.mxu0 %v1274_v25  ;;  %1707 = vmatpush1.bf16.msra.mxu1 %v1276_v26  ;;  %v1388_v25 = vld [vmem:[#allocation2 + $0x670] sm:$0xff]  ;;  %v1395_v26 = vld [vmem:[#allocation2 + $0x6a8] sm:$0xff] }
 0x431   :  { %1626 = vmatprep.subr.bf16.mxu0 %v1283_v27  ;;  %1708 = vmatprep.subr.bf16.mxu1 %v1285_v28  ;;  %v1397_v27 = vld [vmem:[#allocation2 + $0x6b8] sm:$0xff]  ;;  %v1394_v28 = vld [vmem:[#allocation2 + $0x6a0] sm:$0xff] }
 0x434   :  { %1627 = vmatpush1.bf16.msra.mxu0 %v1282_v29  ;;  %1709 = vmatpush1.bf16.msra.mxu1 %v1284_v31  ;;  %v1396_v29 = vld [vmem:[#allocation2 + $0x6b0] sm:$0xff]  ;;  %v1403_v31 = vld [vmem:[#allocation2 + $0x6e8] sm:$0xff] }
 0x435   :  { %1628 = vmatprep.subr.bf16.mxu0 %v1291_v32  ;;  %1710 = vmatprep.subr.bf16.mxu1 %v1293_v33  ;;  %v1405_v32 = vld [vmem:[#allocation2 + $0x6f8] sm:$0xff]  ;;  %v1402_v33 = vld [vmem:[#allocation2 + $0x6e0] sm:$0xff] }
 0x438   :  { %1629 = vmatpush1.bf16.msra.mxu0 %v1290_v34  ;;  %1711 = vmatpush1.bf16.msra.mxu1 %v1292_v35  ;;  %v1404_v34 = vld [vmem:[#allocation2 + $0x6f0] sm:$0xff]  ;;  %v1411_v35 = vld [vmem:[#allocation2 + $0x728] sm:$0xff] }
 0x439   :  { %1630 = vmatprep.subr.bf16.mxu0 %v1299_v37  ;;  %1712 = vmatprep.subr.bf16.mxu1 %v1301_v38  ;;  %v1413_v37 = vld [vmem:[#allocation2 + $0x738] sm:$0xff]  ;;  %v1410_v38 = vld [vmem:[#allocation2 + $0x720] sm:$0xff] }
 0x43c   :  { %1631 = vmatpush1.bf16.msra.mxu0 %v1298_v40  ;;  %1713 = vmatpush1.bf16.msra.mxu1 %v1300_v41  ;;  %v1412_v40 = vld [vmem:[#allocation2 + $0x730] sm:$0xff]  ;;  %v1419_v41 = vld [vmem:[#allocation2 + $0x768] sm:$0xff] }
 0x43d   :  { %1632 = vmatprep.subr.bf16.mxu0 %v1307_v42  ;;  %1714 = vmatprep.subr.bf16.mxu1 %v1309_v43  ;;  %v1421_v42 = vld [vmem:[#allocation2 + $0x778] sm:$0xff]  ;;  %v1418_v43 = vld [vmem:[#allocation2 + $0x760] sm:$0xff] }
 0x440   :  { %1633 = vmatpush1.bf16.msra.mxu0 %v1306_v44  ;;  %1715 = vmatpush1.bf16.msra.mxu1 %v1308_v45  ;;  %v1420_v44 = vld [vmem:[#allocation2 + $0x770] sm:$0xff]  ;;  %v1427_v45 = vld [vmem:[#allocation2 + $0x7a8] sm:$0xff] }
 0x441   :  { %1643 = vmatprep.subr.bf16.mxu0 %v1315_v46  ;;  %1725 = vmatprep.subr.bf16.mxu1 %v1317_v47  ;;  %v1429_v46 = vld [vmem:[#allocation2 + $0x7b8] sm:$0xff]  ;;  %v1426_v47 = vld [vmem:[#allocation2 + $0x7a0] sm:$0xff] }
 0x443   :  { %1635 = vmatmul.mubr.bf16.vlgmr.msra.gmra.mrb[12].mxu0 %v3296_v5  ;;  %1717 = vmatmul.mubr.bf16.vlgmr.msra.gmra.mrb[12].mxu1 %v3296_v5  ;;  %v1341_v5 = vld [vmem:[#allocation2 + $0x4f8] sm:$0xff] }
 0x444   :  { %1644 = vmatpush1.bf16.msra.mxu0 %v1314_v48  ;;  %1726 = vmatpush1.bf16.msra.mxu1 %v1316_v49  ;;  %v1428_v48 = vld [vmem:[#allocation2 + $0x7b0] sm:$0xff]  ;;  %v1435_v49 = vld [vmem:[#allocation2 + $0x7e8] sm:$0xff] }
 0x445   :  { %1645 = vmatprep.subr.bf16.mxu0 %v1323_v50  ;;  %1727 = vmatprep.subr.bf16.mxu1 %v1325_v51  ;;  %v1437_v50 = vld [vmem:[#allocation2 + $0x7f8] sm:$0xff]  ;;  %v1434_v51 = vld [vmem:[#allocation2 + $0x7e0] sm:$0xff] }
 0x446   :  { %1675 = vmatprep.mubr.bf16.mxu0 %v3302_v8  ;;  %1757 = vmatprep.mubr.bf16.mxu1 %v3302_v8  ;;  %v1346_v8 = vld [vmem:[#allocation2 + $0x520] sm:$0xff] }
 0x448   :  { %1646 = vmatpush1.bf16.msra.mxu0 %v1322_v52  ;;  %1728 = vmatpush1.bf16.msra.mxu1 %v1324_v53  ;;  %v1436_v52 = vld [vmem:[#allocation2 + $0x7f0] sm:$0xff] }
 0x449   :  { %1647 = vmatprep.subr.bf16.mxu0 %v1331_v54  ;;  %1729 = vmatprep.subr.bf16.mxu1 %v1333_v6 }
 0x44c   :  { %1648 = vmatpush1.bf16.msra.mxu0 %v1330_v55  ;;  %1730 = vmatpush1.bf16.msra.mxu1 %v1332_v58 }
 0x44d   :  { %1649 = vmatprep.subr.bf16.mxu0 %v1339_v59  ;;  %1731 = vmatprep.subr.bf16.mxu1 %v1341_v5 }
 0x450   :  { %1650 = vmatpush1.bf16.msra.mxu0 %v1338_v60  ;;  %1732 = vmatpush1.bf16.msra.mxu1 %v1340_v61 }
 0x451   :  { %1651 = vmatprep.subr.bf16.mxu0 %v1347_v62  ;;  %1733 = vmatprep.subr.bf16.mxu1 %v1349_v63 }
 0x454   :  { %1652 = vmatpush1.bf16.msra.mxu0 %v1346_v8  ;;  %1734 = vmatpush1.bf16.msra.mxu1 %v1348_v0 }
 0x455   :  { %1653 = vmatprep.subr.bf16.mxu0 %v1355_v1  ;;  %1735 = vmatprep.subr.bf16.mxu1 %v1357_v36 }
 0x458   :  { %1654 = vmatpush1.bf16.msra.mxu0 %v1354_v2  ;;  %1736 = vmatpush1.bf16.msra.mxu1 %v1356_v39 }
 0x459   :  { %1655 = vmatprep.subr.bf16.mxu0 %v1363_v3  ;;  %1737 = vmatprep.subr.bf16.mxu1 %v1365_v56 }
 0x45c   :  { %1656 = vmatpush1.bf16.msra.mxu0 %v1362_v4  ;;  %1738 = vmatpush1.bf16.msra.mxu1 %v1364_v57 }
 0x45d   :  { %1657 = vmatprep.subr.bf16.mxu0 %v1371_v9  ;;  %1739 = vmatprep.subr.bf16.mxu1 %v1373_v10 }
 0x460   :  { %1658 = vmatpush1.bf16.msra.mxu0 %v1370_v11  ;;  %1740 = vmatpush1.bf16.msra.mxu1 %v1372_v12 }
 0x461   :  { %1659 = vmatprep.subr.bf16.mxu0 %v1379_v13  ;;  %1741 = vmatprep.subr.bf16.mxu1 %v1381_v15 }
 0x464   :  { %1660 = vmatpush1.bf16.msra.mxu0 %v1378_v20  ;;  %1742 = vmatpush1.bf16.msra.mxu1 %v1380_v21 }
 0x465   :  { %1661 = vmatprep.subr.bf16.mxu0 %v1387_v22  ;;  %1743 = vmatprep.subr.bf16.mxu1 %v1389_v23 }
 0x468   :  { %1662 = vmatpush1.bf16.msra.mxu0 %v1386_v24  ;;  %1744 = vmatpush1.bf16.msra.mxu1 %v1388_v25 }
 0x469   :  { %1663 = vmatprep.subr.bf16.mxu0 %v1395_v26  ;;  %1745 = vmatprep.subr.bf16.mxu1 %v1397_v27 }
 0x46c   :  { %1664 = vmatpush1.bf16.msra.mxu0 %v1394_v28  ;;  %1746 = vmatpush1.bf16.msra.mxu1 %v1396_v29 }
 0x46d   :  { %1665 = vmatprep.subr.bf16.mxu0 %v1403_v31  ;;  %1747 = vmatprep.subr.bf16.mxu1 %v1405_v32 }
 0x470   :  { %1666 = vmatpush1.bf16.msra.mxu0 %v1402_v33  ;;  %1748 = vmatpush1.bf16.msra.mxu1 %v1404_v34 }
 0x471   :  { %1667 = vmatprep.subr.bf16.mxu0 %v1411_v35  ;;  %1749 = vmatprep.subr.bf16.mxu1 %v1413_v37 }
 0x474   :  { %1668 = vmatpush1.bf16.msra.mxu0 %v1410_v38  ;;  %1750 = vmatpush1.bf16.msra.mxu1 %v1412_v40 }
 0x475   :  { %1669 = vmatprep.subr.bf16.mxu0 %v1419_v41  ;;  %1751 = vmatprep.subr.bf16.mxu1 %v1421_v42 }
 0x478   :  { %1670 = vmatpush1.bf16.msra.mxu0 %v1418_v43  ;;  %1752 = vmatpush1.bf16.msra.mxu1 %v1420_v44 }
 0x479   :  { %1671 = vmatprep.subr.bf16.mxu0 %v1427_v45  ;;  %1753 = vmatprep.subr.bf16.mxu1 %v1429_v46 }
 0x47c   :  { %1672 = vmatpush1.bf16.msra.mxu0 %v1426_v47  ;;  %1754 = vmatpush1.bf16.msra.mxu1 %v1428_v48 }
 0x47d   :  { %1673 = vmatprep.subr.bf16.mxu0 %v1435_v49  ;;  %1755 = vmatprep.subr.bf16.mxu1 %v1437_v50 }
 0x480   :  { %1674 = vmatpush1.bf16.msra.mxu0 %v1434_v51  ;;  %1756 = vmatpush1.bf16.msra.mxu1 %v1436_v52 }
 0x483   :  { %1676 = vmatmul.mubr.bf16.vlgmr.msra.gmra.mrb[12].mxu0 %v3300_v7  ;;  %1758 = vmatmul.mubr.bf16.vlgmr.msra.gmra.mrb[12].mxu1 %v3300_v7 }
 0x4d6   :  { %v3320_v53 = vpop.f32.mrb[8].mxu0  ;;  %v3322_v54 = vpop.f32.mrb[8].mxu1 }
 0x4d7   :  { %v1768_v6 = vrot.slane %v3320_v53, 4  ;;  %v1824_v55 = vmul.f32 %v3320_v53, %v3320_v53  ;;  %v1780_v58 = vrot.slane %v3322_v54, 4  ;;  %v1826_v59 = vmul.f32 %v3322_v54, %v3322_v54  ;;  %v3330_v5 = vpop.f32.mrb[9].mxu0  ;;  %v3332_v60 = vpop.f32.mrb[9].mxu1 }
 0x4d8   :  { %v1774_v7 = vrot.slane %v3330_v5, 4  ;;  %v1825_v61 = vmul.f32 %v3330_v5, %v3330_v5  ;;  %v1786_v62 = vrot.slane %v3332_v60, 4  ;;  %v1827_v63 = vmul.f32 %v3332_v60, %v3332_v60  ;;  %v1517_v8 = vpop.f32.mrb[10].mxu0  ;;  %v1599_v0 = vpop.f32.mrb[10].mxu1 }
 0x4d9   :  { %v1769_v1 = vadd.f32 %v1768_v6, %v3320_v53  ;;  %v1832_v36 = vrot.slane %v1824_v55, 4  ;;  %v1781_v2 = vadd.f32 %v1780_v58, %v3322_v54  ;;  %v1844_v39 = vrot.slane %v1826_v59, 4  ;;  %v1518_v3 = vpop.f32.mrb[11].mxu0  ;;  %v1600_v56 = vpop.f32.mrb[11].mxu1 }
 0x4da   :  { %v1775_v4 = vadd.f32 %v1774_v7, %v3330_v5  ;;  %v1838_v57 = vrot.slane %v1825_v61, 4  ;;  %v1787_v9 = vadd.f32 %v1786_v62, %v3332_v60  ;;  %v1850_v10 = vrot.slane %v1827_v63, 4 }
 0x4db   :  { %v1770_v11 = vrot.slane %v1769_v1, 2  ;;  %v1833_v12 = vadd.f32 %v1832_v36, %v1824_v55  ;;  %v1782_v13 = vrot.slane %v1781_v2, 2  ;;  %v1845_v15 = vadd.f32 %v1844_v39, %v1826_v59 }
 0x4dc   :  { %v1776_v20 = vrot.slane %v1775_v4, 2  ;;  %v1839_v21 = vadd.f32 %v1838_v57, %v1825_v61  ;;  %v1788_v22 = vrot.slane %v1787_v9, 2  ;;  %v1851_v23 = vadd.f32 %v1850_v10, %v1827_v63 }
 0x4dd   :  { %v1771_v24 = vadd.f32 %v1770_v11, %v1769_v1  ;;  %v1834_v25 = vrot.slane %v1833_v12, 2  ;;  %v1783_v26 = vadd.f32 %v1782_v13, %v1781_v2  ;;  %v1846_v27 = vrot.slane %v1845_v15, 2 }
 0x4de   :  { %v1777_v28 = vadd.f32 %v1776_v20, %v1775_v4  ;;  %v1840_v29 = vrot.slane %v1839_v21, 2  ;;  %v1789_v31 = vadd.f32 %v1788_v22, %v1787_v9  ;;  %v1852_v32 = vrot.slane %v1851_v23, 2  ;;  %v3347_v22 = vld [vmem:[%s3507_s10] sm:$0xff] }
 0x4df   :  { %v1772_v33 = vrot.slane %v1771_v24, 1  ;;  %v1835_v34 = vadd.f32 %v1834_v25, %v1833_v12  ;;  %v1784_v35 = vrot.slane %v1783_v26, 1  ;;  %v1847_v37 = vadd.f32 %v1846_v27, %v1845_v15 }
 0x4e0   :  { %v1778_v38 = vrot.slane %v1777_v28, 1  ;;  %v1841_v40 = vadd.f32 %v1840_v29, %v1839_v21  ;;  %v1790_v41 = vrot.slane %v1789_v31, 1  ;;  %v1853_v42 = vadd.f32 %v1852_v32, %v1851_v23 }
 0x4e1   :  { %v1773_v43 = vadd.f32 %v1772_v33, %v1771_v24  ;;  %v1836_v44 = vrot.slane %v1835_v34, 1  ;;  %v1785_v45 = vadd.f32 %v1784_v35, %v1783_v26  ;;  %v1848_v46 = vrot.slane %v1847_v37, 1 }
 0x4e2   :  { %v1779_v47 = vadd.f32 %v1778_v38, %v1777_v28  ;;  %v1842_v48 = vrot.slane %v1841_v40, 1  ;;  %v1791_v49 = vadd.f32 %v1790_v41, %v1789_v31  ;;  %v1854_v50 = vrot.slane %v1853_v42, 1 }
 0x4e3   :  { %v1816_v51 = vmul.f32 0.125, %v1773_v43  ;;  %v1837_v52 = vadd.f32 %v1836_v44, %v1835_v34  ;;  %v1818_v6 = vmul.f32 0.125, %v1785_v45  ;;  %v1849_v55 = vadd.f32 %v1848_v46, %v1847_v37 }
 0x4e4   :  { %v1817_v58 = vmul.f32 0.125, %v1779_v47  ;;  %v1843_v59 = vadd.f32 %v1842_v48, %v1841_v40  ;;  %v1819_v7 = vmul.f32 0.125, %v1791_v49  ;;  %v1855_v61 = vadd.f32 %v1854_v50, %v1853_v42 }
 0x4e5   :  { %v1880_v62 = vmul.f32 0.125, %v1837_v52  ;;  %v1888_v63 = vmul.f32 %v1816_v51, %v1816_v51  ;;  %v1882_v8 = vmul.f32 0.125, %v1849_v55  ;;  %v1890_v0 = vmul.f32 %v1818_v6, %v1818_v6 }
 0x4e6   :  { %v1881_v1 = vmul.f32 0.125, %v1843_v59  ;;  %v1889_v36 = vmul.f32 %v1817_v58, %v1817_v58  ;;  %v1883_v2 = vmul.f32 0.125, %v1855_v61  ;;  %v1891_v39 = vmul.f32 %v1819_v7, %v1819_v7 }
 0x4e7   :  { %v1896_v3 = vsub.f32 %v1880_v62, %v1888_v63  ;;  %v1898_v56 = vsub.f32 %v1882_v8, %v1890_v0  ;;  %v1932_v23 = vrot.slane %v3347_v22, %v3205_v16  ;;  %v1940_v24 = vrot.slane %v3347_v22, %v3269_v17 }
 0x4e8   :  { %v1897_v4 = vsub.f32 %v1881_v1, %v1889_v36  ;;  %v1899_v57 = vsub.f32 %v1883_v2, %v1891_v39  ;;  %v1936_v25 = vrot.slane %v3347_v22, %v3211_v18  ;;  %v1944_v27 = vrot.slane %v3347_v22, %v3272_v19 }
 0x4e9   :  { %v1904_v9 = vmax.f32 %v1896_v3, 0.0  ;;  %v1906_v10 = vmax.f32 %v1898_v56, 0.0 }
 0x4ea   :  { %v1905_v11 = vmax.f32 %v1897_v4, 0.0  ;;  %v1907_v12 = vmax.f32 %v1899_v57, 0.0 }
 0x4eb   :  { %v1912_v13 = vadd.f32 0.8, %v1904_v9  ;;  %v1914_v15 = vadd.f32 0.8, %v1906_v10 }
 0x4ec   :  { %v1913_v20 = vadd.f32 0.8, %v1905_v11  ;;  %v1915_v21 = vadd.f32 0.8, %v1907_v12 }
 0x4ed   :  { %2815 = vrsqrt.f32 %v1912_v13 }
 0x4ee   :  { %2817 = vrsqrt.f32 %v1914_v15 }
 0x4ef   :  { %2819 = vrsqrt.f32 %v1913_v20 }
 0x4f0   :  { %2821 = vrsqrt.f32 %v1915_v21 }
 0x4f7   :  { %v2816_v26 = vpop.eup %2815 }
 0x4f8   :  { %v2818_v28 = vpop.eup %2817  ;;  %v3357_v29 = vmul.f32 %v2816_v26, %v1932_v23 }
 0x4f9   :  { %v2820_v31 = vpop.eup %2819  ;;  %v3359_v32 = vmul.f32 %v2818_v28, %v1940_v24 }
 0x4fa   :  { %v2822_v33 = vpop.eup %2821  ;;  %v1977_v34 = vmul.f32 %v3357_v29, %v1816_v51  ;;  %v3362_v35 = vmul.f32 %v2820_v31, %v1936_v25 }
 0x4fb   :  { %v1979_v37 = vmul.f32 %v3359_v32, %v1818_v6  ;;  %v3365_v38 = vmul.f32 %v2822_v33, %v1944_v27 }
 0x4fc   :  { %v1978_v40 = vmul.f32 %v3362_v35, %v1817_v58 }
 0x4fd   :  { %v1980_v41 = vmul.f32 %v3365_v38, %v1819_v7 }
 0x4fe   :  { %v1993_v42 = vcombine.low %v1977_v34, %v1978_v40 }
 0x4ff   :  { %v1994_v43 = vcombine.low %v1979_v37, %v1980_v41 }
 0x500   :  { %v3370_v44 = vrot.slane %v1993_v42, %v3216_v30 }
 0x501   :  { %v3373_v45 = vrot.slane %v1994_v43, %v3216_v30 }
 0x503   :  { %v2025_v46 = vcombine.low %v3370_v44, %v3373_v45 }
 0x556   :  { %v3377_v47 = vpop.f32.mrb[12].mxu0  ;;  %v3379_v48 = vpop.f32.mrb[12].mxu1 }
 0x557   :  { %v1792_v49 = vrot.slane %v3377_v47, 4  ;;  %v1828_v50 = vmul.f32 %v3377_v47, %v3377_v47  ;;  %v1804_v51 = vrot.slane %v3379_v48, 4  ;;  %v1830_v52 = vmul.f32 %v3379_v48, %v3379_v48  ;;  %v3387_v6 = vpop.f32.mrb[13].mxu0  ;;  %v3389_v55 = vpop.f32.mrb[13].mxu1 }
 0x558   :  { %v1798_v58 = vrot.slane %v3387_v6, 4  ;;  %v1829_v59 = vmul.f32 %v3387_v6, %v3387_v6  ;;  %v1810_v7 = vrot.slane %v3389_v55, 4  ;;  %v1831_v61 = vmul.f32 %v3389_v55, %v3389_v55  ;;  %v1681_v62 = vpop.f32.mrb[14].mxu0  ;;  %v1763_v63 = vpop.f32.mrb[14].mxu1 }
 0x559   :  { %v1793_v8 = vadd.f32 %v1792_v49, %v3377_v47  ;;  %v1856_v0 = vrot.slane %v1828_v50, 4  ;;  %v1805_v1 = vadd.f32 %v1804_v51, %v3379_v48  ;;  %v1868_v36 = vrot.slane %v1830_v52, 4  ;;  %v1682_v2 = vpop.f32.mrb[15].mxu0  ;;  %v1764_v39 = vpop.f32.mrb[15].mxu1 }
 0x55a   :  { %v1799_v3 = vadd.f32 %v1798_v58, %v3387_v6  ;;  %v1862_v56 = vrot.slane %v1829_v59, 4  ;;  %v1811_v4 = vadd.f32 %v1810_v7, %v3389_v55  ;;  %v1874_v57 = vrot.slane %v1831_v61, 4 }
 0x55b   :  { %v1794_v9 = vrot.slane %v1793_v8, 2  ;;  %v1857_v10 = vadd.f32 %v1856_v0, %v1828_v50  ;;  %v1806_v11 = vrot.slane %v1805_v1, 2  ;;  %v1869_v12 = vadd.f32 %v1868_v36, %v1830_v52 }
 0x55c   :  { %v1800_v13 = vrot.slane %v1799_v3, 2  ;;  %v1863_v15 = vadd.f32 %v1862_v56, %v1829_v59  ;;  %v1812_v20 = vrot.slane %v1811_v4, 2  ;;  %v1875_v21 = vadd.f32 %v1874_v57, %v1831_v61 }
 0x55d   :  { %v1795_v23 = vadd.f32 %v1794_v9, %v1793_v8  ;;  %v1858_v24 = vrot.slane %v1857_v10, 2  ;;  %v1807_v25 = vadd.f32 %v1806_v11, %v1805_v1  ;;  %v1870_v26 = vrot.slane %v1869_v12, 2 }
 0x55e   :  { %v1801_v27 = vadd.f32 %v1800_v13, %v1799_v3  ;;  %v1864_v28 = vrot.slane %v1863_v15, 2  ;;  %v1813_v31 = vadd.f32 %v1812_v20, %v1811_v4  ;;  %v1876_v33 = vrot.slane %v1875_v21, 2 }
 0x55f   :  { %v1796_v34 = vrot.slane %v1795_v23, 1  ;;  %v1859_v37 = vadd.f32 %v1858_v24, %v1857_v10  ;;  %v1808_v40 = vrot.slane %v1807_v25, 1  ;;  %v1871_v41 = vadd.f32 %v1870_v26, %v1869_v12 }
 0x560   :  { %v1802_v42 = vrot.slane %v1801_v27, 1  ;;  %v1865_v43 = vadd.f32 %v1864_v28, %v1863_v15  ;;  %v1814_v49 = vrot.slane %v1813_v31, 1  ;;  %v1877_v50 = vadd.f32 %v1876_v33, %v1875_v21 }
 0x561   :  { %v1797_v51 = vadd.f32 %v1796_v34, %v1795_v23  ;;  %v1860_v52 = vrot.slane %v1859_v37, 1  ;;  %v1809_v58 = vadd.f32 %v1808_v40, %v1807_v25  ;;  %v1872_v59 = vrot.slane %v1871_v41, 1 }
 0x562   :  { %v1803_v7 = vadd.f32 %v1802_v42, %v1801_v27  ;;  %v1866_v61 = vrot.slane %v1865_v43, 1  ;;  %v1815_v62 = vadd.f32 %v1814_v49, %v1813_v31  ;;  %v1878_v63 = vrot.slane %v1877_v50, 1 }
 0x563   :  { %v1820_v8 = vmul.f32 0.125, %v1797_v51  ;;  %v1861_v0 = vadd.f32 %v1860_v52, %v1859_v37  ;;  %v1822_v1 = vmul.f32 0.125, %v1809_v58  ;;  %v1873_v36 = vadd.f32 %v1872_v59, %v1871_v41 }
 0x564   :  { %v1821_v2 = vmul.f32 0.125, %v1803_v7  ;;  %v1867_v39 = vadd.f32 %v1866_v61, %v1865_v43  ;;  %v1823_v3 = vmul.f32 0.125, %v1815_v62  ;;  %v1879_v56 = vadd.f32 %v1878_v63, %v1877_v50 }
 0x565   :  { %v1884_v4 = vmul.f32 0.125, %v1861_v0  ;;  %v1892_v57 = vmul.f32 %v1820_v8, %v1820_v8  ;;  %v1886_v9 = vmul.f32 0.125, %v1873_v36  ;;  %v1894_v10 = vmul.f32 %v1822_v1, %v1822_v1 }
 0x566   :  { %v1885_v11 = vmul.f32 0.125, %v1867_v39  ;;  %v1893_v12 = vmul.f32 %v1821_v2, %v1821_v2  ;;  %v1887_v13 = vmul.f32 0.125, %v1879_v56  ;;  %v1895_v15 = vmul.f32 %v1823_v3, %v1823_v3 }
 0x567   :  { %v1900_v20 = vsub.f32 %v1884_v4, %v1892_v57  ;;  %v1902_v21 = vsub.f32 %v1886_v9, %v1894_v10  ;;  %v1947_v40 = vsub.s32 4, %v3202_v14  ;;  %v1955_v41 = vsub.s32 6, %v3202_v14 }
 0x568   :  { %v1901_v23 = vsub.f32 %v1885_v11, %v1893_v12  ;;  %v1903_v24 = vsub.f32 %v1887_v13, %v1895_v15  ;;  %v1951_v42 = vsub.s32 5, %v3202_v14  ;;  %v1959_v43 = vsub.s32 7, %v3202_v14 }
 0x569   :  { %v1908_v25 = vmax.f32 %v1900_v20, 0.0  ;;  %v1910_v26 = vmax.f32 %v1902_v21, 0.0  ;;  %v1948_v49 = vrot.slane %v3347_v22, %v1947_v40  ;;  %v1956_v50 = vrot.slane %v3347_v22, %v1955_v41 }
 0x56a   :  { %v1909_v27 = vmax.f32 %v1901_v23, 0.0  ;;  %v1911_v28 = vmax.f32 %v1903_v24, 0.0  ;;  %v1952_v51 = vrot.slane %v3347_v22, %v1951_v42  ;;  %v1960_v58 = vrot.slane %v3347_v22, %v1959_v43 }
 0x56b   :  { %v1916_v31 = vadd.f32 0.8, %v1908_v25  ;;  %v1918_v33 = vadd.f32 0.8, %v1910_v26  ;;  %v2047_v22 = vrot.slane %v3357_v29, %v3205_v16  ;;  %v2055_v13 = vrot.slane %v3359_v32, %v3205_v16  ;;  %v1767_v32 = vld [vmem:[%s3508_s11] sm:$0xff] }
 0x56c   :  { %v1917_v34 = vadd.f32 0.8, %v1909_v27  ;;  %v1919_v37 = vadd.f32 0.8, %v1911_v28 }
 0x56d   :  { %2823 = vrsqrt.f32 %v1916_v31  ;;  %v2076_v44 = vmul.f32 %v2047_v22, %v3320_v53  ;;  %v2078_v45 = vmul.f32 %v2055_v13, %v3322_v54 }
 0x56e   :  { %2825 = vrsqrt.f32 %v1918_v33 }
 0x56f   :  { %2827 = vrsqrt.f32 %v1917_v34 }
 0x570   :  { %2829 = vrsqrt.f32 %v1919_v37 }
 0x577   :  { %v2824_v52 = vpop.eup %2823 }
 0x578   :  { %v2826_v59 = vpop.eup %2825  ;;  %v1973_v7 = vmul.f32 %v2824_v52, %v1948_v49 }
 0x579   :  { %v2828_v61 = vpop.eup %2827  ;;  %v1975_v62 = vmul.f32 %v2826_v59, %v1956_v50 }
 0x57a   :  { %v2830_v63 = vpop.eup %2829  ;;  %v1981_v0 = vmul.f32 %v1973_v7, %v1820_v8  ;;  %v1974_v36 = vmul.f32 %v2828_v61, %v1952_v51  ;;  %v2051_v8 = vrot.slane %v3362_v35, %v3205_v16  ;;  %v2063_v15 = vrot.slane %v1973_v7, %v3205_v16 }
 0x57b   :  { %v1983_v39 = vmul.f32 %v1975_v62, %v1822_v1  ;;  %v1976_v56 = vmul.f32 %v2830_v63, %v1960_v58  ;;  %v2033_v1 = vrot.slane %v2025_v46, %v3216_v30  ;;  %v2071_v29 = vrot.slane %v1975_v62, %v3205_v16 }
 0x57c   :  { %v1982_v4 = vmul.f32 %v1974_v36, %v1821_v2  ;;  %v2059_v2 = vrot.slane %v3365_v38, %v3205_v16  ;;  %v2067_v20 = vrot.slane %v1974_v36, %v3205_v16  ;;  %v2077_v38 = vmul.f32 %v2051_v8, %v3330_v5 }
 0x57d   :  { %v1984_v14 = vmul.f32 %v1976_v56, %v1823_v3  ;;  %v2075_v35 = vrot.slane %v1976_v56, %v3205_v16  ;;  %v2080_v23 = vmul.f32 %v2063_v15, %v3377_v47  ;;  %v2082_v24 = vmul.f32 %v2071_v29, %v3379_v48 }
 0x57e   :  { %v1995_v57 = vcombine.low %v1981_v0, %v1982_v4  ;;  %v2081_v25 = vmul.f32 %v2067_v20, %v3387_v6 }
 0x57f   :  { %v1996_v9 = vcombine.low %v1983_v39, %v1984_v14  ;;  %v2083_v26 = vmul.f32 %v2075_v35, %v3389_v55 }
 0x580   :  { %v2017_v10 = vrot.slane %v1995_v57, %v3216_v30 }
 0x581   :  { %v2024_v11 = vrot.slane %v1996_v9, %v3216_v30 }
 0x583   :  { %v2026_v12 = vcombine.low %v2017_v10, %v2024_v11 }
 0x585   :  { %v2040_v3 = vrot.slane %v2026_v12, %v3216_v30  ;;  %v2079_v30 = vmul.f32 %v2059_v2, %v3332_v60 }
 0x587   :  { %v2041_v21 = vcombine.low %v2033_v1, %v2040_v3 }
 0x589   :  { %v2043_v46 = vsub.f32 %v1767_v32, %v2041_v21 }
 0x58b   :  { %v2088_v27 = vrot.slane %v2043_v46, %v3205_v16  ;;  %v2092_v28 = vrot.slane %v2043_v46, %v3211_v18  ;;  %v2096_v53 = vrot.slane %v2043_v46, %v3269_v17  ;;  %v2100_v54 = vrot.slane %v2043_v46, %v3272_v19 }
 0x58c   :  { %v2104_v5 = vrot.slane %v2043_v46, %v1947_v40  ;;  %v2108_v31 = vrot.slane %v2043_v46, %v1951_v42  ;;  %v2112_v60 = vrot.slane %v2043_v46, %v1955_v41  ;;  %v2116_v33 = vrot.slane %v2043_v46, %v1959_v43 }
 0x58d   :  { %v2125_v34 = vadd.f32 %v2088_v27, %v2076_v44  ;;  %v2126_v47 = vadd.f32 %v2092_v28, %v2077_v38  ;;  %v2127_v37 = vadd.f32 %v2096_v53, %v2078_v45  ;;  %v2128_v48 = vadd.f32 %v2100_v54, %v2079_v30 }
 0x58e   :  { %v2129_v49 = vadd.f32 %v2104_v5, %v2080_v23  ;;  %v2130_v6 = vadd.f32 %v2108_v31, %v2081_v25  ;;  %v2131_v50 = vadd.f32 %v2112_v60, %v2082_v24  ;;  %v2132_v55 = vadd.f32 %v2116_v33, %v2083_v26 }
 0x58f   :  { %v2133_v51 = vmul.f32 0.2, %v2125_v34  ;;  %v2134_v16 = vmul.f32 0.2, %v2126_v47  ;;  %v2135_v52 = vmul.f32 0.2, %v2127_v37 }
 0x590   :  { %v2136_v18 = vmul.f32 0.2, %v2128_v48  ;;  %v2137_v58 = vmul.f32 0.2, %v2129_v49  ;;  %v2138_v17 = vmul.f32 0.2, %v2130_v6 }
 0x591   :  { %v2139_v59 = vmul.f32 0.2, %v2131_v50  ;;  %v2140_v19 = vmul.f32 0.2, %v2132_v55  ;;  %v3443_v40 = vmax.f32 %v2125_v34, %v2133_v51  ;;  %v2142_v41 = vmax.f32 %v2126_v47, %v2134_v16 }
 0x592   :  { %v3445_v42 = vmax.f32 %v2127_v37, %v2135_v52  ;;  %v2144_v43 = vmax.f32 %v2128_v48, %v2136_v18  ;;  %v3447_v7 = vmax.f32 %v2129_v49, %v2137_v58  ;;  %v3449_v61 = vmax.f32 %v2130_v6, %v2138_v17 }
 0x593   :  { %v3451_v62 = vmax.f32 %v2131_v50, %v2139_v59  ;;  %v3453_v63 = vmax.f32 %v2132_v55, %v2140_v19  ;;  %v2149_v0 = vpack.c.bf16 %v3443_v40, %v3443_v40  ;;  %v2150_v36 = vpack.c.bf16 %v2142_v41, %v2142_v41 }
 0x594   :  { %v2151_v39 = vpack.c.bf16 %v3445_v42, %v3445_v42  ;;  %v2152_v56 = vpack.c.bf16 %v2144_v43, %v2144_v43  ;;  %v2153_v4 = vpack.c.bf16 %v3447_v7, %v3447_v7  ;;  %v2154_v14 = vpack.c.bf16 %v3449_v61, %v3449_v61 }
 0x595   :  { %v2155_v57 = vpack.c.bf16 %v3451_v62, %v3451_v62  ;;  %v2156_v9 = vpack.c.bf16 %v3453_v63, %v3453_v63 }
 0x596   :  { %2995 = dma.done.wait [#allocation4 + $0x1], 8192 }
 0x597   :  { %2996 = vsyncadd [#allocation4 + $0x1], 4294959104  ;;  %2264 = vmatprep.mubr.bf16.mxu0 %v2150_v36  ;;  %2304 = vmatprep.mubr.bf16.mxu1 %v2152_v56  ;;  %v2169_v10 = vld [vmem:[#allocation3 + $0x40] sm:$0xff]  ;;  %v2170_v13 = vld [vmem:[#allocation3 + $0x48] sm:$0xff]  ;;  %s3021_s11 = smov [#allocation14]  }
 0x598   :  { %v2185_v11 = vld [vmem:[#allocation3 + $0xc0] sm:$0xff]  ;;  %2528 = vmatprep.subr.bf16.mxu0 %v2169_v10  ;;  %v2186_v8 = vld [vmem:[#allocation3 + $0xc8] sm:$0xff]  ;;  %v2171_v3 = vld [vmem:[#allocation3 + $0x50] sm:$0xff]  ;;  %s2401_s23 = sshll.u32 %s3021_s11, 4  ;;  %s2402_s23 = int_to_ptr.vmem [resolvable:$true] %s2401_s23 }
 0x599   :  { %v2161_v12 = vld [vmem:[#allocation3] sm:$0xff]  ;;  %2550 = vmatprep.subr.bf16.mxu1 %v2185_v11  ;;  %v2162_v1 = vld [vmem:[#allocation3 + $0x8] sm:$0xff]  ;;  %v2187_v15 = vld [vmem:[#allocation3 + $0xd0] sm:$0xff]  ;;  %s2965_s25 = scalar_lea.vmem %s2402_s23, 64  ;;  %p2970_p7 = scmp.lt.s32.totalorder %s2402_s23, %s2402_s23 }
 0x59a   :  { %v2177_v22 = vld [vmem:[#allocation3 + $0x80] sm:$0xff]  ;;  %2529 = vmatpush3.bf16.msra.mxu0 %v2161_v12  ;;  %v2178_v2 = vld [vmem:[#allocation3 + $0x88] sm:$0xff]  ;;  %v2163_v29 = vld [vmem:[#allocation3 + $0x10] sm:$0xff]  ;;  %p2966_p6 = scmp.ne.s32.totalorder %s2402_s23, %s2965_s25  ;;  %p2971_p8 = scmp.lt.s32.totalorder %s2965_s25, %s2965_s25 }
 0x59b   :  { %2551 = vmatpush3.bf16.msra.mxu1 %v2177_v22  ;;  %2530 = vmatprep.subr.bf16.mxu0 %v2170_v13  ;;  %v2179_v20 = vld [vmem:[#allocation3 + $0x90] sm:$0xff]  ;;  %v2172_v32 = vld [vmem:[#allocation3 + $0x58] sm:$0xff]  ;;  %v2173_v45 = vld [vmem:[#allocation3 + $0x60] sm:$0xff] }
 0x59c   :  { %2552 = vmatprep.subr.bf16.mxu1 %v2186_v8  ;;  %v2188_v35 = vld [vmem:[#allocation3 + $0xd8] sm:$0xff]  ;;  %v2189_v38 = vld [vmem:[#allocation3 + $0xe0] sm:$0xff]  ;;  %v2174_v23 = vld [vmem:[#allocation3 + $0x68] sm:$0xff]  ;;  %p2972_p9 = por %p2971_p8, %p2970_p7 }
 0x59d   :  { %v2164_v21 = vld [vmem:[#allocation3 + $0x18] sm:$0xff]  ;;  %v2165_v30 = vld [vmem:[#allocation3 + $0x20] sm:$0xff]  ;;  %v2190_v24 = vld [vmem:[#allocation3 + $0xe8] sm:$0xff] }
 0x59e   :  { %2531 = vmatpush3.bf16.msra.mxu0 %v2162_v1  ;;  %v2180_v44 = vld [vmem:[#allocation3 + $0x98] sm:$0xff]  ;;  %v2181_v46 = vld [vmem:[#allocation3 + $0xa0] sm:$0xff]  ;;  %v2166_v25 = vld [vmem:[#allocation3 + $0x28] sm:$0xff]  ;;  %p2973_p10 = pnand %p2972_p9, %p2966_p6 }
 0x59f   :  { %2553 = vmatpush3.bf16.msra.mxu1 %v2178_v2  ;;  %2532 = vmatprep.subr.bf16.mxu0 %v2171_v3  ;;  %v2182_v26 = vld [vmem:[#allocation3 + $0xa8] sm:$0xff]  ;;  %v2175_v27 = vld [vmem:[#allocation3 + $0x70] sm:$0xff]  ;;  %v2176_v5 = vld [vmem:[#allocation3 + $0x78] sm:$0xff] }
 0x5a0   :  { %2554 = vmatprep.subr.bf16.mxu1 %v2187_v15  ;;  %v2191_v28 = vld [vmem:[#allocation3 + $0xf0] sm:$0xff]  ;;  %v2192_v31 = vld [vmem:[#allocation3 + $0xf8] sm:$0xff]  ;;  %v2201_v34 = vld [vmem:[#allocation3 + $0x140] sm:$0xff] }
 0x5a1   :  { %v2167_v53 = vld [vmem:[#allocation3 + $0x30] sm:$0xff]  ;;  %v2168_v60 = vld [vmem:[#allocation3 + $0x38] sm:$0xff]  ;;  %v2217_v47 = vld [vmem:[#allocation3 + $0x1c0] sm:$0xff] }
 0x5a2   :  { %2533 = vmatpush3.bf16.msra.mxu0 %v2163_v29  ;;  %v2183_v54 = vld [vmem:[#allocation3 + $0xb0] sm:$0xff]  ;;  %v2184_v33 = vld [vmem:[#allocation3 + $0xb8] sm:$0xff]  ;;  %v2193_v37 = vld [vmem:[#allocation3 + $0x100] sm:$0xff] }
 0x5a3   :  { %2555 = vmatpush3.bf16.msra.mxu1 %v2179_v20  ;;  %2534 = vmatprep.subr.bf16.mxu0 %v2172_v32  ;;  %v2209_v48 = vld [vmem:[#allocation3 + $0x180] sm:$0xff]  ;;  %v2202_v49 = vld [vmem:[#allocation3 + $0x148] sm:$0xff]  ;;  %v2203_v51 = vld [vmem:[#allocation3 + $0x150] sm:$0xff] }
 0x5a4   :  { %2556 = vmatprep.subr.bf16.mxu1 %v2188_v35  ;;  %v2218_v6 = vld [vmem:[#allocation3 + $0x1c8] sm:$0xff]  ;;  %v2219_v16 = vld [vmem:[#allocation3 + $0x1d0] sm:$0xff]  ;;  %v2204_v58 = vld [vmem:[#allocation3 + $0x158] sm:$0xff] }
 0x5a5   :  { %v2194_v50 = vld [vmem:[#allocation3 + $0x108] sm:$0xff]  ;;  %v2195_v52 = vld [vmem:[#allocation3 + $0x110] sm:$0xff]  ;;  %v2220_v17 = vld [vmem:[#allocation3 + $0x1d8] sm:$0xff] }
 0x5a6   :  { %2535 = vmatpush3.bf16.msra.mxu0 %v2164_v21  ;;  %v2210_v55 = vld [vmem:[#allocation3 + $0x188] sm:$0xff]  ;;  %v2211_v18 = vld [vmem:[#allocation3 + $0x190] sm:$0xff]  ;;  %v2196_v59 = vld [vmem:[#allocation3 + $0x118] sm:$0xff] }
 0x5a7   :  { %2557 = vmatpush3.bf16.msra.mxu1 %v2180_v44  ;;  %2536 = vmatprep.subr.bf16.mxu0 %v2173_v45  ;;  %v2212_v19 = vld [vmem:[#allocation3 + $0x198] sm:$0xff]  ;;  %v2205_v40 = vld [vmem:[#allocation3 + $0x160] sm:$0xff]  ;;  %v2206_v61 = vld [vmem:[#allocation3 + $0x168] sm:$0xff] }
 0x5a8   :  { %2558 = vmatprep.subr.bf16.mxu1 %v2189_v38  ;;  %v2221_v41 = vld [vmem:[#allocation3 + $0x1e0] sm:$0xff]  ;;  %v2222_v63 = vld [vmem:[#allocation3 + $0x1e8] sm:$0xff]  ;;  %v2223_v56 = vld [vmem:[#allocation3 + $0x1f0] sm:$0xff] }
 0x5a9   :  { %v2197_v42 = vld [vmem:[#allocation3 + $0x120] sm:$0xff]  ;;  %v2214_v36 = vld [vmem:[#allocation3 + $0x1a8] sm:$0xff]  ;;  %v2208_v10 = vld [vmem:[#allocation3 + $0x178] sm:$0xff] }
 0x5aa   :  { %2537 = vmatpush3.bf16.msra.mxu0 %v2165_v30  ;;  %v2213_v43 = vld [vmem:[#allocation3 + $0x1a0] sm:$0xff]  ;;  %v2224_v11 = vld [vmem:[#allocation3 + $0x1f8] sm:$0xff] }
 0x5ab   :  { %2559 = vmatpush3.bf16.msra.mxu1 %v2181_v46  ;;  %2538 = vmatprep.subr.bf16.mxu0 %v2174_v23  ;;  %v2200_v12 = vld [vmem:[#allocation3 + $0x138] sm:$0xff]  ;;  %v2516_v1 = vld [vmem:[#allocation13] ss:$0 sm:$0xff] }
 0x5ac   :  { %2560 = vmatprep.subr.bf16.mxu1 %v2190_v24  ;;  %v2216_v22 = vld [vmem:[#allocation3 + $0x1b8] sm:$0xff] }
 0x5ae   :  { %2539 = vmatpush3.bf16.msra.mxu0 %v2166_v25 }
 0x5af   :  { %2561 = vmatpush3.bf16.msra.mxu1 %v2182_v26  ;;  %2540 = vmatprep.subr.bf16.mxu0 %v2175_v27 }
 0x5b0   :  { %2562 = vmatprep.subr.bf16.mxu1 %v2191_v28 }
 0x5b2   :  { %2541 = vmatpush3.bf16.msra.mxu0 %v2167_v53 }
 0x5b3   :  { %2563 = vmatpush3.bf16.msra.mxu1 %v2183_v54  ;;  %2542 = vmatprep.subr.bf16.mxu0 %v2176_v5 }
 0x5b4   :  { %2564 = vmatprep.subr.bf16.mxu1 %v2192_v31 }
 0x5b6   :  { %2543 = vmatpush3.bf16.msra.mxu0 %v2168_v60 }
 0x5b7   :  { %2565 = vmatpush3.bf16.msra.mxu1 %v2184_v33  ;;  %2572 = vmatprep.subr.bf16.mxu0 %v2201_v34 }
 0x5b8   :  { %2594 = vmatprep.subr.bf16.mxu1 %v2217_v47 }
 0x5b9   :  { %2265 = vmatmul.mubr.bf16.vlgmr.msra.gmra.mrb[16].mxu0 %v2149_v0  ;;  %v2198_v0 = vld [vmem:[#allocation3 + $0x128] sm:$0xff] }
 0x5ba   :  { %2305 = vmatmul.mubr.bf16.vlgmr.msra.gmra.mrb[16].mxu1 %v2151_v39  ;;  %2573 = vmatpush3.bf16.msra.mxu0 %v2193_v37  ;;  %v2207_v39 = vld [vmem:[#allocation3 + $0x170] sm:$0xff] }
 0x5bb   :  { %2595 = vmatpush3.bf16.msra.mxu1 %v2209_v48  ;;  %2574 = vmatprep.subr.bf16.mxu0 %v2202_v49 }
 0x5bc   :  { %2596 = vmatprep.subr.bf16.mxu1 %v2218_v6  ;;  %2344 = vmatprep.mubr.bf16.mxu0 %v2154_v14  ;;  %v2199_v14 = vld [vmem:[#allocation3 + $0x130] sm:$0xff] }
 0x5bd   :  { %2384 = vmatprep.mubr.bf16.mxu1 %v2156_v9  ;;  %v2215_v9 = vld [vmem:[#allocation3 + $0x1b0] sm:$0xff] }
 0x5be   :  { %2575 = vmatpush3.bf16.msra.mxu0 %v2194_v50 }
 0x5bf   :  { %2597 = vmatpush3.bf16.msra.mxu1 %v2210_v55  ;;  %2576 = vmatprep.subr.bf16.mxu0 %v2203_v51 }
 0x5c0   :  { %2598 = vmatprep.subr.bf16.mxu1 %v2219_v16 }
 0x5c2   :  { %2577 = vmatpush3.bf16.msra.mxu0 %v2195_v52 }
 0x5c3   :  { %2599 = vmatpush3.bf16.msra.mxu1 %v2211_v18  ;;  %2578 = vmatprep.subr.bf16.mxu0 %v2204_v58 }
 0x5c4   :  { %2600 = vmatprep.subr.bf16.mxu1 %v2220_v17 }
 0x5c6   :  { %2579 = vmatpush3.bf16.msra.mxu0 %v2196_v59 }
 0x5c7   :  { %2601 = vmatpush3.bf16.msra.mxu1 %v2212_v19  ;;  %2580 = vmatprep.subr.bf16.mxu0 %v2205_v40 }
 0x5c8   :  { %2602 = vmatprep.subr.bf16.mxu1 %v2221_v41 }
 0x5ca   :  { %2581 = vmatpush3.bf16.msra.mxu0 %v2197_v42 }
 0x5cb   :  { %2603 = vmatpush3.bf16.msra.mxu1 %v2213_v43  ;;  %2582 = vmatprep.subr.bf16.mxu0 %v2206_v61 }
 0x5cc   :  { %2604 = vmatprep.subr.bf16.mxu1 %v2222_v63 }
 0x5ce   :  { %2583 = vmatpush3.bf16.msra.mxu0 %v2198_v0 }
 0x5cf   :  { %2605 = vmatpush3.bf16.msra.mxu1 %v2214_v36  ;;  %2584 = vmatprep.subr.bf16.mxu0 %v2207_v39 }
 0x5d0   :  { %2606 = vmatprep.subr.bf16.mxu1 %v2223_v56 }
 0x5d2   :  { %2585 = vmatpush3.bf16.msra.mxu0 %v2199_v14 }
 0x5d3   :  { %2607 = vmatpush3.bf16.msra.mxu1 %v2215_v9  ;;  %2586 = vmatprep.subr.bf16.mxu0 %v2208_v10 }
 0x5d4   :  { %2608 = vmatprep.subr.bf16.mxu1 %v2224_v11 }
 0x5d6   :  { %2587 = vmatpush3.bf16.msra.mxu0 %v2200_v12 }
 0x5d7   :  { %2609 = vmatpush3.bf16.msra.mxu1 %v2216_v22 }
 0x5d9   :  { %2345 = vmatmul.mubr.bf16.vlgmr.msra.gmra.mrb[20].mxu0 %v2153_v4 }
 0x5da   :  { %2385 = vmatmul.mubr.bf16.vlgmr.msra.gmra.mrb[20].mxu1 %v2155_v57 }
 0x68c   :  { %v2544_v13 = vpop.f32.mrb[16].mxu0 }
 0x68d   :  { %v2566_v8 = vpop.f32.mrb[16].mxu1  ;;  %v2545_v2 = vpop.f32.mrb[17].mxu0 }
 0x68e   :  { %v2567_v3 = vpop.f32.mrb[17].mxu1  ;;  %v2546_v15 = vadd.f32 %v2545_v2, %v2544_v13  ;;  %v2547_v20 = vpop.f32.mrb[18].mxu0 }
 0x68f   :  { %v2568_v29 = vadd.f32 %v2567_v3, %v2566_v8  ;;  %v2569_v32 = vpop.f32.mrb[18].mxu1  ;;  %v2548_v35 = vpop.f32.mrb[19].mxu0 }
 0x690   :  { %v2570_v21 = vpop.f32.mrb[19].mxu1  ;;  %v2267_v44 = vadd.f32 %v2546_v15, %v2516_v1 }
 0x692   :  { %v2307_v45 = vadd.f32 %v2568_v29, %v2267_v44 }
 0x6ac   :  { %v2588_v38 = vpop.f32.mrb[20].mxu0 }
 0x6ad   :  { %v2610_v7 = vpop.f32.mrb[20].mxu1  ;;  %v2589_v4 = vpop.f32.mrb[21].mxu0 }
 0x6ae   :  { %v2611_v30 = vpop.f32.mrb[21].mxu1  ;;  %v2590_v46 = vadd.f32 %v2589_v4, %v2588_v38  ;;  %v2591_v57 = vpop.f32.mrb[22].mxu0 }
 0x6af   :  { %v2612_v62 = vadd.f32 %v2611_v30, %v2610_v7  ;;  %v2613_v23 = vpop.f32.mrb[22].mxu1  ;;  %v2592_v24 = vpop.f32.mrb[23].mxu0 }
 0x6b0   :  { %v2614_v25 = vpop.f32.mrb[23].mxu1  ;;  %v2347_v26 = vadd.f32 %v2590_v46, %v2307_v45 }
 0x6b2   :  { %v2387_v27 = vadd.f32 %v2612_v62, %v2347_v26 }
 0x6b4   :  { %2831 = vtanh.f32 %v2387_v27 }
 0x6be   :  { %v2832_v28 = vpop.eup %2831 }
 0x6bf   :  { %v2393_v53 = vpack.c.bf16 %v2832_v28, %v2832_v28 }
 0x6c1   :  { %2394 = vst [vmem:[#allocation14] sm:$0xf] %v2393_v53 }
 0x6c2   :  { %2976 = shalt.err (!%p2973_p10)
}
 0x6c3   :  { %s2977_s6 = scalar_lea.hbm %s3511_s14, 64 }
 0x6c4   :  { %p2978_p11 = scmp.ne.s32.totalorder %s3511_s14, %s2977_s6  ;;  %p2981_p12 = scmp.lt.u32.totalorder %s2977_s6, %s3511_s14 }
 0x6c6   :  { %p2983_p13 = pnand %p2981_p12, %p2978_p11 }
 0x6c8   :  { %2986 = shalt.err (!%p2983_p13)
}
 0x6c9   :  { %2404 = dma.vmem_to_hbm [thread:$0]  %s2402_s23, 64, %s3511_s14, [#allocation7]  }
 0x6ca   :  { %2997 = dma.done.wait [#allocation7], 64  }
 0x6cb   :  { %2998 = vsyncadd [#allocation7], 4294967232 }
 0x6cc   :  { %2408 = vsyncpa [#allocation6], 1 }
 0x6cd   :  { %2409 = vsyncpa [#allocation9], 1 }
 0x6ce   :  { %2410 = vsyncpa [#allocation12], 1 }
 0x6cf   :  { %2411 = vsyncpa [#allocation7], 1 }
 0x6d0   :  { %2412 = vsyncmov [#allocation4] }
 0x6d3   :  { %s2413_s27 = vpop.sfrf %2412 }
 0x6d4   :  { %p2517_p0 = scmp.ne.s32.totalorder %s2413_s27, 0 }
 0x6d6   :  { %2417 = shalt.err (%p2517_p0)  }
 0x6d7   :  { %2419 = vsyncmov [#allocation4 + $0x1] }
 0x6da   :  { %s2420_s28 = vpop.sfrf %2419 }
 0x6db   :  { %p2518_p1 = scmp.ne.s32.totalorder %s2420_s28, 0 }
 0x6dd   :  { %2424 = shalt.err (%p2518_p1)  }

</bundles_post_ra>
